<compile_context>
chip_gen: v7x
topology: tpu7x:2x2x1
jax: 0.10.0
libtpu: 0.0.40
codegen_flags: <defaults>
</compile_context>

<pallas_src>
import functools

import numpy as np
import jax
import jax.numpy as jnp
from jax import lax
from jax.experimental import pallas as pl
from jax.experimental.pallas import tpu as pltpu


# --------------------------------------------------------------------------------------
# static geometry helpers (3x3 conv, pad 1, 2x2/2 max pool)
# --------------------------------------------------------------------------------------
def _round_up(v, m):
    return -(-v // m) * m


def _layer_geometry(h, w):
    hp, wp = h + 2, w + 2           # padded spatial dims
    n = hp * wp                     # flat padded pixel count
    margin = wp + 1                 # max |flat shift| of a 3x3 window / 2x2 pool
    ext = n + 2 * margin            # extended flat length (with shift margins)
    return dict(h=h, w=w, hp=hp, wp=wp, n=n, margin=margin, ext=ext,
                slab=_round_up(ext, 128),      # per-batch lane slab, 128-aligned
                npool=n - (wp + 1),            # length after the 4-way sliding max
                ho=h // 2, wo=w // 2)


def _make_selection_int8(g, g_next):
    """(npool, next_slab) 0/1 int8: stride-2 pool downsample + zero re-pad for the next layer."""
    s = np.zeros((g['npool'], g_next['slab']), np.int8)
    for ho in range(g['ho']):
        for wo in range(g['wo']):
            row = (2 * ho + 1) * g['wp'] + (2 * wo + 1)
            col = g_next['margin'] + (ho + 1) * g_next['wp'] + (wo + 1)
            s[row, col] = 1
    return s


def _make_final_selection_int8(g):
    """(npool, Ho*Wo) 0/1 int8: stride-2 pool downsample to the dense final spatial grid."""
    s = np.zeros((g['npool'], g['ho'] * g['wo']), np.int8)
    for ho in range(g['ho']):
        for wo in range(g['wo']):
            row = (2 * ho + 1) * g['wp'] + (2 * wo + 1)
            s[row, ho * g['wo'] + wo] = 1
    return s


# --------------------------------------------------------------------------------------
# fused Pallas kernel: (pad -> conv -> BN(eval) -> ReLU -> maxpool) x 2, whole batch, one call
# --------------------------------------------------------------------------------------
def _fused_kernel(geoms, batch, x_ref, *refs):
    """
    x_ref:   (B, Cin0, H*W)           raw flattened input (padding is built in-kernel)
    per layer i: w_ref (Cout, 9*Cin_p), scale_ref (Cout,1), shift_ref (Cout,1), sel_ref int8
    o_ref:   (B, Cout_last, Ho*Wo)    already NCHW-ordered per batch element
    a_refs:  per-layer activation scratch (Cin_p, B*SLAB + 128), lane-stacked batch slabs
    p_ref:   (Kmax, B*SLAB0) VMEM scratch — im2col patch matrix (reused per layer)
    """
    n_layers = len(geoms)
    layer_refs = [refs[4 * i: 4 * i + 4] for i in range(n_layers)]
    o_ref = refs[4 * n_layers]
    a_refs = list(refs[4 * n_layers + 1: 4 * n_layers + 1 + n_layers])
    p_ref = refs[4 * n_layers + 1 + n_layers]

    # ---- build layer-0 extended flat-padded activation in VMEM (folds the jnp.pad chain) ----
    g0 = geoms[0]
    a0 = a_refs[0]
    a0[...] = jnp.zeros_like(a0)                          # spatial pad + channel pad + margins
    cin0, hw0 = x_ref.shape[1], x_ref.shape[2]
    h0, w0 = g0['h'], g0['w']
    for b in range(batch):
        xb = x_ref[b]                                     # (Cin0, H*W)
        base = b * g0['slab'] + g0['margin'] + g0['wp'] + 1
        for r in range(h0):
            col = base + r * g0['wp']
            a0[0:cin0, col:col + w0] = xb[:, r * w0:(r + 1) * w0]

    for li, g in enumerate(geoms):
        w_ref, sc_ref, sh_ref, sel_ref = layer_refs[li]
        a_ref = a_refs[li]
        cin_p = a_ref.shape[0]
        cout = w_ref.shape[0]
        wp, margin, npool, slab = g['wp'], g['margin'], g['npool'], g['slab']
        width = batch * slab                              # multiple of 128

        # im2col: 9 static lane-shifted, full-width (unmasked, lane-aligned) slice stores.
        for kh in range(3):
            for kw in range(3):
                s = margin + (kh - 1) * wp + (kw - 1)     # always >= 0
                p_ref[(kh * 3 + kw) * cin_p:(kh * 3 + kw + 1) * cin_p, :width] = \
                    a_ref[:, s:s + width]

        # ONE batch-stacked MXU matmul for this layer's conv; folded BN(eval)+bias; ReLU.
        y = jnp.dot(w_ref[...], p_ref[:9 * cin_p, :width],
                    preferred_element_type=jnp.float32)
        y = jnp.maximum(y * sc_ref[...] + sh_ref[...], 0.0)

        # 2x2/2 max pool: sliding max of 4 lane-shifted slices (lane-dense over the whole batch).
        wm = width - (wp + 1)
        ym = jnp.maximum(jnp.maximum(y[:, 0:wm], y[:, 1:1 + wm]),
                         jnp.maximum(y[:, wp:wp + wm], y[:, wp + 1:wp + 1 + wm]))

        # Exact 0/1 selection matmul: stride-2 downsample (+ re-pad for the next layer).
        sel = sel_ref[...].astype(jnp.float32)            # int8 0/1 -> f32, exact
        if li + 1 < n_layers:
            g_next = geoms[li + 1]
            a_next = a_refs[li + 1]
            a_next[...] = jnp.zeros_like(a_next)          # margins / tail / channel pad
            for b in range(batch):
                a_next[0:cout, b * g_next['slab']:(b + 1) * g_next['slab']] = jnp.dot(
                    ym[:, b * slab:b * slab + npool], sel,
                    preferred_element_type=jnp.float32)
        else:
            for b in range(batch):
                o_ref[b] = jnp.dot(ym[:, b * slab:b * slab + npool], sel,
                                   preferred_element_type=jnp.float32)


# --------------------------------------------------------------------------------------
# one-time (model-build-time) parameter prepacking — hoisted out of the per-call jit path
# --------------------------------------------------------------------------------------
def prepack_feature_extractor(layer_params, h, w, eps=1e-5):
    n_layers = len(layer_params)
    geoms = []
    hh, ww = h, w
    for i in range(n_layers):
        kh, kw, _, _ = layer_params[i][0].shape
        assert kh == 3 and kw == 3 and hh % 2 == 0 and ww % 2 == 0
        g = _layer_geometry(hh, ww)
        geoms.append(g)
        hh, ww = g['ho'], g['wo']

    packed, cins_p, couts = [], [], []
    for i, (w_hwio, bias, gamma, beta, mean, var) in enumerate(layer_params):
        w_np = np.asarray(w_hwio, np.float32)
        kh, kw, cin, cout = w_np.shape
        cin_p = _round_up(cin, 8)
        cins_p.append(cin_p)
        couts.append(cout)

        w_pad = np.zeros((kh, kw, cin_p, cout), np.float32)
        w_pad[:, :, :cin, :] = w_np
        wmat = np.ascontiguousarray(w_pad.reshape(kh * kw * cin_p, cout).T)  # (Cout, 9*Cin_p)

        gamma_np = np.asarray(gamma, np.float32)
        beta_np = np.asarray(beta, np.float32)
        mean_np = np.asarray(mean, np.float32)
        var_np = np.asarray(var, np.float32)
        bias_np = np.asarray(bias, np.float32)
        inv = gamma_np / np.sqrt(var_np + eps)
        scale = inv.reshape(cout, 1)
        shift = ((bias_np - mean_np) * inv + beta_np).reshape(cout, 1)

        sel = (_make_selection_int8(geoms[i], geoms[i + 1]) if i + 1 < n_layers
               else _make_final_selection_int8(geoms[i]))

        packed += [jnp.asarray(wmat), jnp.asarray(scale), jnp.asarray(shift), jnp.asarray(sel)]

    cfg = dict(geoms=tuple(geoms), cins_p=tuple(cins_p), couts=tuple(couts))
    return cfg, tuple(packed)


# --------------------------------------------------------------------------------------
# per-call forward: free reshape of x + ONE fused pallas_call
# --------------------------------------------------------------------------------------
def feature_extractor_forward(cfg, x_nchw, *packed):
    geoms, cins_p, couts = cfg['geoms'], cfg['cins_p'], cfg['couts']
    n_layers = len(geoms)
    batch, c_in, h, w = x_nchw.shape
    g_last = geoms[-1]

    x_flat = x_nchw.astype(jnp.float32).reshape(batch, c_in, h * w)   # contiguous, free

    kmax = max(9 * cp for cp in cins_p)
    wmax = max(batch * g['slab'] for g in geoms)
    scratch_shapes = [pltpu.VMEM((cins_p[i], batch * geoms[i]['slab'] + 128), jnp.float32)
                      for i in range(n_layers)]
    scratch_shapes.append(pltpu.VMEM((kmax, wmax), jnp.float32))

    out_shape = jax.ShapeDtypeStruct((batch, couts[-1], g_last['ho'] * g_last['wo']),
                                     jnp.float32)

    # Advisory cost estimate so XLA schedules this tiny custom call sensibly.
    flops = 0
    for i, g in enumerate(geoms):
        flops += 2 * couts[i] * 9 * cins_p[i] * batch * g['slab']          # conv matmul
        sel_cols = geoms[i + 1]['slab'] if i + 1 < n_layers else g['ho'] * g['wo']
        flops += 2 * batch * couts[i] * g['npool'] * sel_cols              # selection matmuls
    bytes_accessed = int(x_flat.size * 4
                         + sum(int(np.prod(p.shape)) * p.dtype.itemsize for p in packed)
                         + batch * couts[-1] * g_last['ho'] * g_last['wo'] * 4)

    out = pl.pallas_call(
        functools.partial(_fused_kernel, geoms, batch),
        out_shape=out_shape,
        scratch_shapes=scratch_shapes,
        cost_estimate=pl.CostEstimate(flops=int(flops), transcendentals=0,
                                      bytes_accessed=bytes_accessed),
    )(x_flat, *packed)

    # (B, Cout, Ho*Wo) is already NCHW order -> PyTorch's .view(batch, -1) is a free reshape.
    return out.reshape(batch, -1)


# --------------------------------------------------------------------------------------
# pure-JAX reference (lax.conv + reduce_window) used to verify the kernel
# --------------------------------------------------------------------------------------
def reference_forward(x_nchw, layer_params, eps=1e-5):
    x = jnp.transpose(x_nchw, (0, 2, 3, 1))
    for (w, b, g, beta, mean, var) in layer_params:
        y = lax.conv_general_dilated(
            x, w, window_strides=(1, 1), padding=[(1, 1), (1, 1)],
            dimension_numbers=('NHWC', 'HWIO', 'NHWC'))
        y = y + b
        y = (y - mean) / jnp.sqrt(var + eps) * g + beta
        y = jnp.maximum(y, 0.0)
        y = lax.reduce_window(y, -jnp.inf, lax.max,
                              window_dimensions=(1, 2, 2, 1),
                              window_strides=(1, 2, 2, 1),
                              padding='VALID')
        x = y
    x = jnp.transpose(x, (0, 3, 1, 2))
    return x.reshape(x.shape[0], -1)


def make_layer_params(key, cin, cout, ksize=3):
    kw_, kb_, kg_, kbe_, km_, kv_ = jax.random.split(key, 6)
    fan_in = cin * ksize * ksize
    w = jax.random.normal(kw_, (ksize, ksize, cin, cout), jnp.float32) / jnp.sqrt(fan_in)
    b = 0.05 * jax.random.normal(kb_, (cout,), jnp.float32)
    gamma = jax.random.uniform(kg_, (cout,), jnp.float32, 0.5, 1.5)
    beta = 0.1 * jax.random.normal(kbe_, (cout,), jnp.float32)
    mean = 0.1 * jax.random.normal(km_, (cout,), jnp.float32)
    var = jax.random.uniform(kv_, (cout,), jnp.float32, 0.5, 1.5)
    return (w, b, gamma, beta, mean, var)


if __name__ == "__main__":
    key = jax.random.PRNGKey(0)
    kx, k0, k1 = jax.random.split(key, 3)

    # x: (batch=2, in_channels=4, H=16, W=16), NCHW like the PyTorch module
    x = jax.random.normal(kx, (2, 4, 16, 16), jnp.float32)

    layer_params = [
        make_layer_params(k0, cin=4, cout=8),    # conv0 -> bn0 -> relu0 -> pool0
        make_layer_params(k1, cin=8, cout=16),   # conv1 -> bn1 -> relu1 -> pool1
    ]

    # One-time prepack (hoisted out of the per-call path), then jit just the thin forward.
    cfg, packed = prepack_feature_extractor(layer_params, h=16, w=16)
    fwd = jax.jit(functools.partial(feature_extractor_forward, cfg))

    out = jax.block_until_ready(fwd(x, *packed))

    ref = reference_forward(x, layer_params)
    assert out.shape == (2, 16 * 4 * 4), out.shape
    assert jnp.allclose(out, ref, atol=1e-4, rtol=1e-4), float(jnp.max(jnp.abs(out - ref)))

    print("KERNEL_OK")
</pallas_src>

<mosaic_0001>
module attributes {stable_mosaic.version = 11 : i64} {
  func.func @_fused_kernel(%arg0: memref<2x4x256xf32, #tpu.memory_space<vmem>>, %arg1: memref<8x72xf32, #tpu.memory_space<vmem>>, %arg2: memref<8x1xf32, #tpu.memory_space<vmem>>, %arg3: memref<8x1xf32, #tpu.memory_space<vmem>>, %arg4: memref<305x128xi8, #tpu.memory_space<vmem>>, %arg5: memref<16x72xf32, #tpu.memory_space<vmem>>, %arg6: memref<16x1xf32, #tpu.memory_space<vmem>>, %arg7: memref<16x1xf32, #tpu.memory_space<vmem>>, %arg8: memref<89x16xi8, #tpu.memory_space<vmem>>, %arg9: memref<2x16x16xf32, #tpu.memory_space<vmem>>, %arg10: memref<8x896xf32, #tpu.memory_space<vmem>>, %arg11: memref<8x384xf32, #tpu.memory_space<vmem>>, %arg12: memref<72x768xf32, #tpu.memory_space<vmem>>) attributes {dimension_semantics = [], scalar_prefetch = 0 : i64, scratch_operands = 3 : i64, tpu.core_type = #tpu.core_type<tc>} {
    %cst = arith.constant 0.000000e+00 : f32
    %0 = vector.broadcast %cst : f32 to vector<8x896xf32>
    %c0 = arith.constant 0 : index
    %c0_0 = arith.constant 0 : index
    %1 = vector.load %arg10[%c0, %c0_0] : memref<8x896xf32, #tpu.memory_space<vmem>>, vector<8x896xf32>
    tpu.vector_store %arg10[%c0, %c0_0], %0 {strides = array<i32>} : memref<8x896xf32, #tpu.memory_space<vmem>>, vector<8x896xf32>,
    %c0_1 = arith.constant 0 : index
    %c0_2 = arith.constant 0 : index
    %c0_3 = arith.constant 0 : index
    %2 = vector.load %arg0[%c0_1, %c0_2, %c0_3] : memref<2x4x256xf32, #tpu.memory_space<vmem>>, vector<1x4x256xf32>
    %3 = vector.shape_cast %2 : vector<1x4x256xf32> to vector<4x256xf32>
    %4 = vector.extract_strided_slice %3 {offsets = [0, 0], sizes = [4, 16], strides = [1, 1]} : vector<4x256xf32> to vector<4x16xf32>
    %c0_4 = arith.constant 0 : index
    %c38 = arith.constant 38 : index
    %5 = vector.load %arg10[%c0_4, %c38] : memref<8x896xf32, #tpu.memory_space<vmem>>, vector<4x16xf32>
    tpu.vector_store %arg10[%c0_4, %c38], %4 {strides = array<i32>} : memref<8x896xf32, #tpu.memory_space<vmem>>, vector<4x16xf32>,
    %6 = vector.extract_strided_slice %3 {offsets = [0, 16], sizes = [4, 16], strides = [1, 1]} : vector<4x256xf32> to vector<4x16xf32>
    %c0_5 = arith.constant 0 : index
    %c56 = arith.constant 56 : index
    %7 = vector.load %arg10[%c0_5, %c56] : memref<8x896xf32, #tpu.memory_space<vmem>>, vector<4x16xf32>
    tpu.vector_store %arg10[%c0_5, %c56], %6 {strides = array<i32>} : memref<8x896xf32, #tpu.memory_space<vmem>>, vector<4x16xf32>,
    %8 = vector.extract_strided_slice %3 {offsets = [0, 32], sizes = [4, 16], strides = [1, 1]} : vector<4x256xf32> to vector<4x16xf32>
    %c0_6 = arith.constant 0 : index
    %c74 = arith.constant 74 : index
    %9 = vector.load %arg10[%c0_6, %c74] : memref<8x896xf32, #tpu.memory_space<vmem>>, vector<4x16xf32>
    tpu.vector_store %arg10[%c0_6, %c74], %8 {strides = array<i32>} : memref<8x896xf32, #tpu.memory_space<vmem>>, vector<4x16xf32>,
    %10 = vector.extract_strided_slice %3 {offsets = [0, 48], sizes = [4, 16], strides = [1, 1]} : vector<4x256xf32> to vector<4x16xf32>
    %c0_7 = arith.constant 0 : index
    %c92 = arith.constant 92 : index
    %11 = vector.load %arg10[%c0_7, %c92] : memref<8x896xf32, #tpu.memory_space<vmem>>, vector<4x16xf32>
    tpu.vector_store %arg10[%c0_7, %c92], %10 {strides = array<i32>} : memref<8x896xf32, #tpu.memory_space<vmem>>, vector<4x16xf32>,
    %12 = vector.extract_strided_slice %3 {offsets = [0, 64], sizes = [4, 16], strides = [1, 1]} : vector<4x256xf32> to vector<4x16xf32>
    %c0_8 = arith.constant 0 : index
    %c110 = arith.constant 110 : index
    %13 = vector.load %arg10[%c0_8, %c110] : memref<8x896xf32, #tpu.memory_space<vmem>>, vector<4x16xf32>
    tpu.vector_store %arg10[%c0_8, %c110], %12 {strides = array<i32>} : memref<8x896xf32, #tpu.memory_space<vmem>>, vector<4x16xf32>,
    %14 = vector.extract_strided_slice %3 {offsets = [0, 80], sizes = [4, 16], strides = [1, 1]} : vector<4x256xf32> to vector<4x16xf32>
    %c0_9 = arith.constant 0 : index
    %c128 = arith.constant 128 : index
    %15 = vector.load %arg10[%c0_9, %c128] : memref<8x896xf32, #tpu.memory_space<vmem>>, vector<4x16xf32>
    tpu.vector_store %arg10[%c0_9, %c128], %14 {strides = array<i32>} : memref<8x896xf32, #tpu.memory_space<vmem>>, vector<4x16xf32>,
    %16 = vector.extract_strided_slice %3 {offsets = [0, 96], sizes = [4, 16], strides = [1, 1]} : vector<4x256xf32> to vector<4x16xf32>
    %c0_10 = arith.constant 0 : index
    %c146 = arith.constant 146 : index
    %17 = vector.load %arg10[%c0_10, %c146] : memref<8x896xf32, #tpu.memory_space<vmem>>, vector<4x16xf32>
    tpu.vector_store %arg10[%c0_10, %c146], %16 {strides = array<i32>} : memref<8x896xf32, #tpu.memory_space<vmem>>, vector<4x16xf32>,
    %18 = vector.extract_strided_slice %3 {offsets = [0, 112], sizes = [4, 16], strides = [1, 1]} : vector<4x256xf32> to vector<4x16xf32>
    %c0_11 = arith.constant 0 : index
    %c164 = arith.constant 164 : index
    %19 = vector.load %arg10[%c0_11, %c164] : memref<8x896xf32, #tpu.memory_space<vmem>>, vector<4x16xf32>
    tpu.vector_store %arg10[%c0_11, %c164], %18 {strides = array<i32>} : memref<8x896xf32, #tpu.memory_space<vmem>>, vector<4x16xf32>,
    %20 = vector.extract_strided_slice %3 {offsets = [0, 128], sizes = [4, 16], strides = [1, 1]} : vector<4x256xf32> to vector<4x16xf32>
    %c0_12 = arith.constant 0 : index
    %c182 = arith.constant 182 : index
    %21 = vector.load %arg10[%c0_12, %c182] : memref<8x896xf32, #tpu.memory_space<vmem>>, vector<4x16xf32>
    tpu.vector_store %arg10[%c0_12, %c182], %20 {strides = array<i32>} : memref<8x896xf32, #tpu.memory_space<vmem>>, vector<4x16xf32>,
    %22 = vector.extract_strided_slice %3 {offsets = [0, 144], sizes = [4, 16], strides = [1, 1]} : vector<4x256xf32> to vector<4x16xf32>
    %c0_13 = arith.constant 0 : index
    %c200 = arith.constant 200 : index
    %23 = vector.load %arg10[%c0_13, %c200] : memref<8x896xf32, #tpu.memory_space<vmem>>, vector<4x16xf32>
    tpu.vector_store %arg10[%c0_13, %c200], %22 {strides = array<i32>} : memref<8x896xf32, #tpu.memory_space<vmem>>, vector<4x16xf32>,
    %24 = vector.extract_strided_slice %3 {offsets = [0, 160], sizes = [4, 16], strides = [1, 1]} : vector<4x256xf32> to vector<4x16xf32>
    %c0_14 = arith.constant 0 : index
    %c218 = arith.constant 218 : index
    %25 = vector.load %arg10[%c0_14, %c218] : memref<8x896xf32, #tpu.memory_space<vmem>>, vector<4x16xf32>
    tpu.vector_store %arg10[%c0_14, %c218], %24 {strides = array<i32>} : memref<8x896xf32, #tpu.memory_space<vmem>>, vector<4x16xf32>,
    %26 = vector.extract_strided_slice %3 {offsets = [0, 176], sizes = [4, 16], strides = [1, 1]} : vector<4x256xf32> to vector<4x16xf32>
    %c0_15 = arith.constant 0 : index
    %c236 = arith.constant 236 : index
    %27 = vector.load %arg10[%c0_15, %c236] : memref<8x896xf32, #tpu.memory_space<vmem>>, vector<4x16xf32>
    tpu.vector_store %arg10[%c0_15, %c236], %26 {strides = array<i32>} : memref<8x896xf32, #tpu.memory_space<vmem>>, vector<4x16xf32>,
    %28 = vector.extract_strided_slice %3 {offsets = [0, 192], sizes = [4, 16], strides = [1, 1]} : vector<4x256xf32> to vector<4x16xf32>
    %c0_16 = arith.constant 0 : index
    %c254 = arith.constant 254 : index
    %29 = vector.load %arg10[%c0_16, %c254] : memref<8x896xf32, #tpu.memory_space<vmem>>, vector<4x16xf32>
    tpu.vector_store %arg10[%c0_16, %c254], %28 {strides = array<i32>} : memref<8x896xf32, #tpu.memory_space<vmem>>, vector<4x16xf32>,
    %30 = vector.extract_strided_slice %3 {offsets = [0, 208], sizes = [4, 16], strides = [1, 1]} : vector<4x256xf32> to vector<4x16xf32>
    %c0_17 = arith.constant 0 : index
    %c272 = arith.constant 272 : index
    %31 = vector.load %arg10[%c0_17, %c272] : memref<8x896xf32, #tpu.memory_space<vmem>>, vector<4x16xf32>
    tpu.vector_store %arg10[%c0_17, %c272], %30 {strides = array<i32>} : memref<8x896xf32, #tpu.memory_space<vmem>>, vector<4x16xf32>,
    %32 = vector.extract_strided_slice %3 {offsets = [0, 224], sizes = [4, 16], strides = [1, 1]} : vector<4x256xf32> to vector<4x16xf32>
    %c0_18 = arith.constant 0 : index
    %c290 = arith.constant 290 : index
    %33 = vector.load %arg10[%c0_18, %c290] : memref<8x896xf32, #tpu.memory_space<vmem>>, vector<4x16xf32>
    tpu.vector_store %arg10[%c0_18, %c290], %32 {strides = array<i32>} : memref<8x896xf32, #tpu.memory_space<vmem>>, vector<4x16xf32>,
    %34 = vector.extract_strided_slice %3 {offsets = [0, 240], sizes = [4, 16], strides = [1, 1]} : vector<4x256xf32> to vector<4x16xf32>
    %c0_19 = arith.constant 0 : index
    %c308 = arith.constant 308 : index
    %35 = vector.load %arg10[%c0_19, %c308] : memref<8x896xf32, #tpu.memory_space<vmem>>, vector<4x16xf32>
    tpu.vector_store %arg10[%c0_19, %c308], %34 {strides = array<i32>} : memref<8x896xf32, #tpu.memory_space<vmem>>, vector<4x16xf32>,
    %c1 = arith.constant 1 : index
    %c0_20 = arith.constant 0 : index
    %c0_21 = arith.constant 0 : index
    %36 = vector.load %arg0[%c1, %c0_20, %c0_21] : memref<2x4x256xf32, #tpu.memory_space<vmem>>, vector<1x4x256xf32>
    %37 = vector.shape_cast %36 : vector<1x4x256xf32> to vector<4x256xf32>
    %38 = vector.extract_strided_slice %37 {offsets = [0, 0], sizes = [4, 16], strides = [1, 1]} : vector<4x256xf32> to vector<4x16xf32>
    %c0_22 = arith.constant 0 : index
    %c422 = arith.constant 422 : index
    %39 = vector.load %arg10[%c0_22, %c422] : memref<8x896xf32, #tpu.memory_space<vmem>>, vector<4x16xf32>
    tpu.vector_store %arg10[%c0_22, %c422], %38 {strides = array<i32>} : memref<8x896xf32, #tpu.memory_space<vmem>>, vector<4x16xf32>,
    %40 = vector.extract_strided_slice %37 {offsets = [0, 16], sizes = [4, 16], strides = [1, 1]} : vector<4x256xf32> to vector<4x16xf32>
    %c0_23 = arith.constant 0 : index
    %c440 = arith.constant 440 : index
    %41 = vector.load %arg10[%c0_23, %c440] : memref<8x896xf32, #tpu.memory_space<vmem>>, vector<4x16xf32>
    tpu.vector_store %arg10[%c0_23, %c440], %40 {strides = array<i32>} : memref<8x896xf32, #tpu.memory_space<vmem>>, vector<4x16xf32>,
    %42 = vector.extract_strided_slice %37 {offsets = [0, 32], sizes = [4, 16], strides = [1, 1]} : vector<4x256xf32> to vector<4x16xf32>
    %c0_24 = arith.constant 0 : index
    %c458 = arith.constant 458 : index
    %43 = vector.load %arg10[%c0_24, %c458] : memref<8x896xf32, #tpu.memory_space<vmem>>, vector<4x16xf32>
    tpu.vector_store %arg10[%c0_24, %c458], %42 {strides = array<i32>} : memref<8x896xf32, #tpu.memory_space<vmem>>, vector<4x16xf32>,
    %44 = vector.extract_strided_slice %37 {offsets = [0, 48], sizes = [4, 16], strides = [1, 1]} : vector<4x256xf32> to vector<4x16xf32>
    %c0_25 = arith.constant 0 : index
    %c476 = arith.constant 476 : index
    %45 = vector.load %arg10[%c0_25, %c476] : memref<8x896xf32, #tpu.memory_space<vmem>>, vector<4x16xf32>
    tpu.vector_store %arg10[%c0_25, %c476], %44 {strides = array<i32>} : memref<8x896xf32, #tpu.memory_space<vmem>>, vector<4x16xf32>,
    %46 = vector.extract_strided_slice %37 {offsets = [0, 64], sizes = [4, 16], strides = [1, 1]} : vector<4x256xf32> to vector<4x16xf32>
    %c0_26 = arith.constant 0 : index
    %c494 = arith.constant 494 : index
    %47 = vector.load %arg10[%c0_26, %c494] : memref<8x896xf32, #tpu.memory_space<vmem>>, vector<4x16xf32>
    tpu.vector_store %arg10[%c0_26, %c494], %46 {strides = array<i32>} : memref<8x896xf32, #tpu.memory_space<vmem>>, vector<4x16xf32>,
    %48 = vector.extract_strided_slice %37 {offsets = [0, 80], sizes = [4, 16], strides = [1, 1]} : vector<4x256xf32> to vector<4x16xf32>
    %c0_27 = arith.constant 0 : index
    %c512 = arith.constant 512 : index
    %49 = vector.load %arg10[%c0_27, %c512] : memref<8x896xf32, #tpu.memory_space<vmem>>, vector<4x16xf32>
    tpu.vector_store %arg10[%c0_27, %c512], %48 {strides = array<i32>} : memref<8x896xf32, #tpu.memory_space<vmem>>, vector<4x16xf32>,
    %50 = vector.extract_strided_slice %37 {offsets = [0, 96], sizes = [4, 16], strides = [1, 1]} : vector<4x256xf32> to vector<4x16xf32>
    %c0_28 = arith.constant 0 : index
    %c530 = arith.constant 530 : index
    %51 = vector.load %arg10[%c0_28, %c530] : memref<8x896xf32, #tpu.memory_space<vmem>>, vector<4x16xf32>
    tpu.vector_store %arg10[%c0_28, %c530], %50 {strides = array<i32>} : memref<8x896xf32, #tpu.memory_space<vmem>>, vector<4x16xf32>,
    %52 = vector.extract_strided_slice %37 {offsets = [0, 112], sizes = [4, 16], strides = [1, 1]} : vector<4x256xf32> to vector<4x16xf32>
    %c0_29 = arith.constant 0 : index
    %c548 = arith.constant 548 : index
    %53 = vector.load %arg10[%c0_29, %c548] : memref<8x896xf32, #tpu.memory_space<vmem>>, vector<4x16xf32>
    tpu.vector_store %arg10[%c0_29, %c548], %52 {strides = array<i32>} : memref<8x896xf32, #tpu.memory_space<vmem>>, vector<4x16xf32>,
    %54 = vector.extract_strided_slice %37 {offsets = [0, 128], sizes = [4, 16], strides = [1, 1]} : vector<4x256xf32> to vector<4x16xf32>
    %c0_30 = arith.constant 0 : index
    %c566 = arith.constant 566 : index
    %55 = vector.load %arg10[%c0_30, %c566] : memref<8x896xf32, #tpu.memory_space<vmem>>, vector<4x16xf32>
    tpu.vector_store %arg10[%c0_30, %c566], %54 {strides = array<i32>} : memref<8x896xf32, #tpu.memory_space<vmem>>, vector<4x16xf32>,
    %56 = vector.extract_strided_slice %37 {offsets = [0, 144], sizes = [4, 16], strides = [1, 1]} : vector<4x256xf32> to vector<4x16xf32>
    %c0_31 = arith.constant 0 : index
    %c584 = arith.constant 584 : index
    %57 = vector.load %arg10[%c0_31, %c584] : memref<8x896xf32, #tpu.memory_space<vmem>>, vector<4x16xf32>
    tpu.vector_store %arg10[%c0_31, %c584], %56 {strides = array<i32>} : memref<8x896xf32, #tpu.memory_space<vmem>>, vector<4x16xf32>,
    %58 = vector.extract_strided_slice %37 {offsets = [0, 160], sizes = [4, 16], strides = [1, 1]} : vector<4x256xf32> to vector<4x16xf32>
    %c0_32 = arith.constant 0 : index
    %c602 = arith.constant 602 : index
    %59 = vector.load %arg10[%c0_32, %c602] : memref<8x896xf32, #tpu.memory_space<vmem>>, vector<4x16xf32>
    tpu.vector_store %arg10[%c0_32, %c602], %58 {strides = array<i32>} : memref<8x896xf32, #tpu.memory_space<vmem>>, vector<4x16xf32>,
    %60 = vector.extract_strided_slice %37 {offsets = [0, 176], sizes = [4, 16], strides = [1, 1]} : vector<4x256xf32> to vector<4x16xf32>
    %c0_33 = arith.constant 0 : index
    %c620 = arith.constant 620 : index
    %61 = vector.load %arg10[%c0_33, %c620] : memref<8x896xf32, #tpu.memory_space<vmem>>, vector<4x16xf32>
    tpu.vector_store %arg10[%c0_33, %c620], %60 {strides = array<i32>} : memref<8x896xf32, #tpu.memory_space<vmem>>, vector<4x16xf32>,
    %62 = vector.extract_strided_slice %37 {offsets = [0, 192], sizes = [4, 16], strides = [1, 1]} : vector<4x256xf32> to vector<4x16xf32>
    %c0_34 = arith.constant 0 : index
    %c638 = arith.constant 638 : index
    %63 = vector.load %arg10[%c0_34, %c638] : memref<8x896xf32, #tpu.memory_space<vmem>>, vector<4x16xf32>
    tpu.vector_store %arg10[%c0_34, %c638], %62 {strides = array<i32>} : memref<8x896xf32, #tpu.memory_space<vmem>>, vector<4x16xf32>,
    %64 = vector.extract_strided_slice %37 {offsets = [0, 208], sizes = [4, 16], strides = [1, 1]} : vector<4x256xf32> to vector<4x16xf32>
    %c0_35 = arith.constant 0 : index
    %c656 = arith.constant 656 : index
    %65 = vector.load %arg10[%c0_35, %c656] : memref<8x896xf32, #tpu.memory_space<vmem>>, vector<4x16xf32>
    tpu.vector_store %arg10[%c0_35, %c656], %64 {strides = array<i32>} : memref<8x896xf32, #tpu.memory_space<vmem>>, vector<4x16xf32>,
    %66 = vector.extract_strided_slice %37 {offsets = [0, 224], sizes = [4, 16], strides = [1, 1]} : vector<4x256xf32> to vector<4x16xf32>
    %c0_36 = arith.constant 0 : index
    %c674 = arith.constant 674 : index
    %67 = vector.load %arg10[%c0_36, %c674] : memref<8x896xf32, #tpu.memory_space<vmem>>, vector<4x16xf32>
    tpu.vector_store %arg10[%c0_36, %c674], %66 {strides = array<i32>} : memref<8x896xf32, #tpu.memory_space<vmem>>, vector<4x16xf32>,
    %68 = vector.extract_strided_slice %37 {offsets = [0, 240], sizes = [4, 16], strides = [1, 1]} : vector<4x256xf32> to vector<4x16xf32>
    %c0_37 = arith.constant 0 : index
    %c692 = arith.constant 692 : index
    %69 = vector.load %arg10[%c0_37, %c692] : memref<8x896xf32, #tpu.memory_space<vmem>>, vector<4x16xf32>
    tpu.vector_store %arg10[%c0_37, %c692], %68 {strides = array<i32>} : memref<8x896xf32, #tpu.memory_space<vmem>>, vector<4x16xf32>,
    %c0_38 = arith.constant 0 : index
    %c0_39 = arith.constant 0 : index
    %70 = vector.load %arg10[%c0_38, %c0_39] : memref<8x896xf32, #tpu.memory_space<vmem>>, vector<8x768xf32>
    %c0_40 = arith.constant 0 : index
    %c0_41 = arith.constant 0 : index
    %71 = vector.load %arg12[%c0_40, %c0_41] : memref<72x768xf32, #tpu.memory_space<vmem>>, vector<8x768xf32>
    tpu.vector_store %arg12[%c0_40, %c0_41], %70 {strides = array<i32>} : memref<72x768xf32, #tpu.memory_space<vmem>>, vector<8x768xf32>,
    %c0_42 = arith.constant 0 : index
    %c1_43 = arith.constant 1 : index
    %72 = vector.load %arg10[%c0_42, %c1_43] : memref<8x896xf32, #tpu.memory_space<vmem>>, vector<8x768xf32>
    %c8 = arith.constant 8 : index
    %c0_44 = arith.constant 0 : index
    %73 = vector.load %arg12[%c8, %c0_44] : memref<72x768xf32, #tpu.memory_space<vmem>>, vector<8x768xf32>
    tpu.vector_store %arg12[%c8, %c0_44], %72 {strides = array<i32>} : memref<72x768xf32, #tpu.memory_space<vmem>>, vector<8x768xf32>,
    %c0_45 = arith.constant 0 : index
    %c2 = arith.constant 2 : index
    %74 = vector.load %arg10[%c0_45, %c2] : memref<8x896xf32, #tpu.memory_space<vmem>>, vector<8x768xf32>
    %c16 = arith.constant 16 : index
    %c0_46 = arith.constant 0 : index
    %75 = vector.load %arg12[%c16, %c0_46] : memref<72x768xf32, #tpu.memory_space<vmem>>, vector<8x768xf32>
    tpu.vector_store %arg12[%c16, %c0_46], %74 {strides = array<i32>} : memref<72x768xf32, #tpu.memory_space<vmem>>, vector<8x768xf32>,
    %c0_47 = arith.constant 0 : index
    %c18 = arith.constant 18 : index
    %76 = vector.load %arg10[%c0_47, %c18] : memref<8x896xf32, #tpu.memory_space<vmem>>, vector<8x768xf32>
    %c24 = arith.constant 24 : index
    %c0_48 = arith.constant 0 : index
    %77 = vector.load %arg12[%c24, %c0_48] : memref<72x768xf32, #tpu.memory_space<vmem>>, vector<8x768xf32>
    tpu.vector_store %arg12[%c24, %c0_48], %76 {strides = array<i32>} : memref<72x768xf32, #tpu.memory_space<vmem>>, vector<8x768xf32>,
    %c0_49 = arith.constant 0 : index
    %c19 = arith.constant 19 : index
    %78 = vector.load %arg10[%c0_49, %c19] : memref<8x896xf32, #tpu.memory_space<vmem>>, vector<8x768xf32>
    %c32 = arith.constant 32 : index
    %c0_50 = arith.constant 0 : index
    %79 = vector.load %arg12[%c32, %c0_50] : memref<72x768xf32, #tpu.memory_space<vmem>>, vector<8x768xf32>
    tpu.vector_store %arg12[%c32, %c0_50], %78 {strides = array<i32>} : memref<72x768xf32, #tpu.memory_space<vmem>>, vector<8x768xf32>,
    %c0_51 = arith.constant 0 : index
    %c20 = arith.constant 20 : index
    %80 = vector.load %arg10[%c0_51, %c20] : memref<8x896xf32, #tpu.memory_space<vmem>>, vector<8x768xf32>
    %c40 = arith.constant 40 : index
    %c0_52 = arith.constant 0 : index
    %81 = vector.load %arg12[%c40, %c0_52] : memref<72x768xf32, #tpu.memory_space<vmem>>, vector<8x768xf32>
    tpu.vector_store %arg12[%c40, %c0_52], %80 {strides = array<i32>} : memref<72x768xf32, #tpu.memory_space<vmem>>, vector<8x768xf32>,
    %c0_53 = arith.constant 0 : index
    %c36 = arith.constant 36 : index
    %82 = vector.load %arg10[%c0_53, %c36] : memref<8x896xf32, #tpu.memory_space<vmem>>, vector<8x768xf32>
    %c48 = arith.constant 48 : index
    %c0_54 = arith.constant 0 : index
    %83 = vector.load %arg12[%c48, %c0_54] : memref<72x768xf32, #tpu.memory_space<vmem>>, vector<8x768xf32>
    tpu.vector_store %arg12[%c48, %c0_54], %82 {strides = array<i32>} : memref<72x768xf32, #tpu.memory_space<vmem>>, vector<8x768xf32>,
    %c0_55 = arith.constant 0 : index
    %c37 = arith.constant 37 : index
    %84 = vector.load %arg10[%c0_55, %c37] : memref<8x896xf32, #tpu.memory_space<vmem>>, vector<8x768xf32>
    %c56_56 = arith.constant 56 : index
    %c0_57 = arith.constant 0 : index
    %85 = vector.load %arg12[%c56_56, %c0_57] : memref<72x768xf32, #tpu.memory_space<vmem>>, vector<8x768xf32>
    tpu.vector_store %arg12[%c56_56, %c0_57], %84 {strides = array<i32>} : memref<72x768xf32, #tpu.memory_space<vmem>>, vector<8x768xf32>,
    %c0_58 = arith.constant 0 : index
    %c38_59 = arith.constant 38 : index
    %86 = vector.load %arg10[%c0_58, %c38_59] : memref<8x896xf32, #tpu.memory_space<vmem>>, vector<8x768xf32>
    %c64 = arith.constant 64 : index
    %c0_60 = arith.constant 0 : index
    %87 = vector.load %arg12[%c64, %c0_60] : memref<72x768xf32, #tpu.memory_space<vmem>>, vector<8x768xf32>
    tpu.vector_store %arg12[%c64, %c0_60], %86 {strides = array<i32>} : memref<72x768xf32, #tpu.memory_space<vmem>>, vector<8x768xf32>,
    %c0_61 = arith.constant 0 : index
    %c0_62 = arith.constant 0 : index
    %88 = vector.load %arg1[%c0_61, %c0_62] : memref<8x72xf32, #tpu.memory_space<vmem>>, vector<8x72xf32>
    %c0_63 = arith.constant 0 : index
    %c0_64 = arith.constant 0 : index
    %89 = vector.load %arg12[%c0_63, %c0_64] : memref<72x768xf32, #tpu.memory_space<vmem>>, vector<72x768xf32>
    %cst_65 = arith.constant dense<0.000000e+00> : vector<8x768xf32>
    %90 = tpu.matmul %88, %89, %cst_65 {dimension_numbers = #tpu.dot_dimension_numbers<[1], [0], [0], [1], [0, 0, 1, 1], [], []>} : vector<8x72xf32>, vector<72x768xf32>, vector<8x768xf32> -> vector<8x768xf32>
    %c0_66 = arith.constant 0 : index
    %c0_67 = arith.constant 0 : index
    %91 = vector.load %arg2[%c0_66, %c0_67] : memref<8x1xf32, #tpu.memory_space<vmem>>, vector<8x1xf32>
    %92 = vector.broadcast %91 : vector<8x1xf32> to vector<8x768xf32>
    %93 = arith.mulf %90, %92 : vector<8x768xf32>
    %c0_68 = arith.constant 0 : index
    %c0_69 = arith.constant 0 : index
    %94 = vector.load %arg3[%c0_68, %c0_69] : memref<8x1xf32, #tpu.memory_space<vmem>>, vector<8x1xf32>
    %95 = vector.broadcast %94 : vector<8x1xf32> to vector<8x768xf32>
    %96 = arith.addf %93, %95 : vector<8x768xf32>
    %cst_70 = arith.constant 0.000000e+00 : f32
    %97 = vector.broadcast %cst_70 : f32 to vector<8x768xf32>
    %98 = arith.maximumf %96, %97 : vector<8x768xf32>
    %99 = vector.extract_strided_slice %98 {offsets = [0, 0], sizes = [8, 749], strides = [1, 1]} : vector<8x768xf32> to vector<8x749xf32>
    %100 = vector.extract_strided_slice %98 {offsets = [0, 1], sizes = [8, 749], strides = [1, 1]} : vector<8x768xf32> to vector<8x749xf32>
    %101 = arith.maximumf %99, %100 : vector<8x749xf32>
    %102 = vector.extract_strided_slice %98 {offsets = [0, 18], sizes = [8, 749], strides = [1, 1]} : vector<8x768xf32> to vector<8x749xf32>
    %103 = vector.extract_strided_slice %98 {offsets = [0, 19], sizes = [8, 749], strides = [1, 1]} : vector<8x768xf32> to vector<8x749xf32>
    %104 = arith.maximumf %102, %103 : vector<8x749xf32>
    %105 = arith.maximumf %101, %104 : vector<8x749xf32>
    %c0_71 = arith.constant 0 : index
    %c0_72 = arith.constant 0 : index
    %106 = vector.load %arg4[%c0_71, %c0_72] : memref<305x128xi8, #tpu.memory_space<vmem>>, vector<305x128xi8>
    %107 = arith.sitofp %106 : vector<305x128xi8> to vector<305x128xf32>
    %cst_73 = arith.constant 0.000000e+00 : f32
    %108 = vector.broadcast %cst_73 : f32 to vector<8x384xf32>
    %c0_74 = arith.constant 0 : index
    %c0_75 = arith.constant 0 : index
    %109 = vector.load %arg11[%c0_74, %c0_75] : memref<8x384xf32, #tpu.memory_space<vmem>>, vector<8x384xf32>
    tpu.vector_store %arg11[%c0_74, %c0_75], %108 {strides = array<i32>} : memref<8x384xf32, #tpu.memory_space<vmem>>, vector<8x384xf32>,
    %110 = vector.extract_strided_slice %105 {offsets = [0, 0], sizes = [8, 305], strides = [1, 1]} : vector<8x749xf32> to vector<8x305xf32>
    %cst_76 = arith.constant dense<0.000000e+00> : vector<8x128xf32>
    %111 = tpu.matmul %110, %107, %cst_76 {dimension_numbers = #tpu.dot_dimension_numbers<[1], [0], [0], [1], [0, 0, 1, 1], [], []>} : vector<8x305xf32>, vector<305x128xf32>, vector<8x128xf32> -> vector<8x128xf32>
    %c0_77 = arith.constant 0 : index
    %c0_78 = arith.constant 0 : index
    %112 = vector.load %arg11[%c0_77, %c0_78] : memref<8x384xf32, #tpu.memory_space<vmem>>, vector<8x128xf32>
    tpu.vector_store %arg11[%c0_77, %c0_78], %111 {strides = array<i32>} : memref<8x384xf32, #tpu.memory_space<vmem>>, vector<8x128xf32>,
    %113 = vector.extract_strided_slice %105 {offsets = [0, 384], sizes = [8, 305], strides = [1, 1]} : vector<8x749xf32> to vector<8x305xf32>
    %cst_79 = arith.constant dense<0.000000e+00> : vector<8x128xf32>
    %114 = tpu.matmul %113, %107, %cst_79 {dimension_numbers = #tpu.dot_dimension_numbers<[1], [0], [0], [1], [0, 0, 1, 1], [], []>} : vector<8x305xf32>, vector<305x128xf32>, vector<8x128xf32> -> vector<8x128xf32>
    %c0_80 = arith.constant 0 : index
    %c128_81 = arith.constant 128 : index
    %115 = vector.load %arg11[%c0_80, %c128_81] : memref<8x384xf32, #tpu.memory_space<vmem>>, vector<8x128xf32>
    tpu.vector_store %arg11[%c0_80, %c128_81], %114 {strides = array<i32>} : memref<8x384xf32, #tpu.memory_space<vmem>>, vector<8x128xf32>,
    %c0_82 = arith.constant 0 : index
    %c0_83 = arith.constant 0 : index
    %116 = vector.load %arg11[%c0_82, %c0_83] : memref<8x384xf32, #tpu.memory_space<vmem>>, vector<8x256xf32>
    %c0_84 = arith.constant 0 : index
    %c0_85 = arith.constant 0 : index
    %117 = vector.load %arg12[%c0_84, %c0_85] : memref<72x768xf32, #tpu.memory_space<vmem>>, vector<8x256xf32>
    tpu.vector_store %arg12[%c0_84, %c0_85], %116 {strides = array<i32>} : memref<72x768xf32, #tpu.memory_space<vmem>>, vector<8x256xf32>,
    %c0_86 = arith.constant 0 : index
    %c1_87 = arith.constant 1 : index
    %118 = vector.load %arg11[%c0_86, %c1_87] : memref<8x384xf32, #tpu.memory_space<vmem>>, vector<8x256xf32>
    %c8_88 = arith.constant 8 : index
    %c0_89 = arith.constant 0 : index
    %119 = vector.load %arg12[%c8_88, %c0_89] : memref<72x768xf32, #tpu.memory_space<vmem>>, vector<8x256xf32>
    tpu.vector_store %arg12[%c8_88, %c0_89], %118 {strides = array<i32>} : memref<72x768xf32, #tpu.memory_space<vmem>>, vector<8x256xf32>,
    %c0_90 = arith.constant 0 : index
    %c2_91 = arith.constant 2 : index
    %120 = vector.load %arg11[%c0_90, %c2_91] : memref<8x384xf32, #tpu.memory_space<vmem>>, vector<8x256xf32>
    %c16_92 = arith.constant 16 : index
    %c0_93 = arith.constant 0 : index
    %121 = vector.load %arg12[%c16_92, %c0_93] : memref<72x768xf32, #tpu.memory_space<vmem>>, vector<8x256xf32>
    tpu.vector_store %arg12[%c16_92, %c0_93], %120 {strides = array<i32>} : memref<72x768xf32, #tpu.memory_space<vmem>>, vector<8x256xf32>,
    %c0_94 = arith.constant 0 : index
    %c10 = arith.constant 10 : index
    %122 = vector.load %arg11[%c0_94, %c10] : memref<8x384xf32, #tpu.memory_space<vmem>>, vector<8x256xf32>
    %c24_95 = arith.constant 24 : index
    %c0_96 = arith.constant 0 : index
    %123 = vector.load %arg12[%c24_95, %c0_96] : memref<72x768xf32, #tpu.memory_space<vmem>>, vector<8x256xf32>
    tpu.vector_store %arg12[%c24_95, %c0_96], %122 {strides = array<i32>} : memref<72x768xf32, #tpu.memory_space<vmem>>, vector<8x256xf32>,
    %c0_97 = arith.constant 0 : index
    %c11 = arith.constant 11 : index
    %124 = vector.load %arg11[%c0_97, %c11] : memref<8x384xf32, #tpu.memory_space<vmem>>, vector<8x256xf32>
    %c32_98 = arith.constant 32 : index
    %c0_99 = arith.constant 0 : index
    %125 = vector.load %arg12[%c32_98, %c0_99] : memref<72x768xf32, #tpu.memory_space<vmem>>, vector<8x256xf32>
    tpu.vector_store %arg12[%c32_98, %c0_99], %124 {strides = array<i32>} : memref<72x768xf32, #tpu.memory_space<vmem>>, vector<8x256xf32>,
    %c0_100 = arith.constant 0 : index
    %c12 = arith.constant 12 : index
    %126 = vector.load %arg11[%c0_100, %c12] : memref<8x384xf32, #tpu.memory_space<vmem>>, vector<8x256xf32>
    %c40_101 = arith.constant 40 : index
    %c0_102 = arith.constant 0 : index
    %127 = vector.load %arg12[%c40_101, %c0_102] : memref<72x768xf32, #tpu.memory_space<vmem>>, vector<8x256xf32>
    tpu.vector_store %arg12[%c40_101, %c0_102], %126 {strides = array<i32>} : memref<72x768xf32, #tpu.memory_space<vmem>>, vector<8x256xf32>,
    %c0_103 = arith.constant 0 : index
    %c20_104 = arith.constant 20 : index
    %128 = vector.load %arg11[%c0_103, %c20_104] : memref<8x384xf32, #tpu.memory_space<vmem>>, vector<8x256xf32>
    %c48_105 = arith.constant 48 : index
    %c0_106 = arith.constant 0 : index
    %129 = vector.load %arg12[%c48_105, %c0_106] : memref<72x768xf32, #tpu.memory_space<vmem>>, vector<8x256xf32>
    tpu.vector_store %arg12[%c48_105, %c0_106], %128 {strides = array<i32>} : memref<72x768xf32, #tpu.memory_space<vmem>>, vector<8x256xf32>,
    %c0_107 = arith.constant 0 : index
    %c21 = arith.constant 21 : index
    %130 = vector.load %arg11[%c0_107, %c21] : memref<8x384xf32, #tpu.memory_space<vmem>>, vector<8x256xf32>
    %c56_108 = arith.constant 56 : index
    %c0_109 = arith.constant 0 : index
    %131 = vector.load %arg12[%c56_108, %c0_109] : memref<72x768xf32, #tpu.memory_space<vmem>>, vector<8x256xf32>
    tpu.vector_store %arg12[%c56_108, %c0_109], %130 {strides = array<i32>} : memref<72x768xf32, #tpu.memory_space<vmem>>, vector<8x256xf32>,
    %c0_110 = arith.constant 0 : index
    %c22 = arith.constant 22 : index
    %132 = vector.load %arg11[%c0_110, %c22] : memref<8x384xf32, #tpu.memory_space<vmem>>, vector<8x256xf32>
    %c64_111 = arith.constant 64 : index
    %c0_112 = arith.constant 0 : index
    %133 = vector.load %arg12[%c64_111, %c0_112] : memref<72x768xf32, #tpu.memory_space<vmem>>, vector<8x256xf32>
    tpu.vector_store %arg12[%c64_111, %c0_112], %132 {strides = array<i32>} : memref<72x768xf32, #tpu.memory_space<vmem>>, vector<8x256xf32>,
    %c0_113 = arith.constant 0 : index
    %c0_114 = arith.constant 0 : index
    %134 = vector.load %arg5[%c0_113, %c0_114] : memref<16x72xf32, #tpu.memory_space<vmem>>, vector<16x72xf32>
    %c0_115 = arith.constant 0 : index
    %c0_116 = arith.constant 0 : index
    %135 = vector.load %arg12[%c0_115, %c0_116] : memref<72x768xf32, #tpu.memory_space<vmem>>, vector<72x256xf32>
    %cst_117 = arith.constant dense<0.000000e+00> : vector<16x256xf32>
    %136 = tpu.matmul %134, %135, %cst_117 {dimension_numbers = #tpu.dot_dimension_numbers<[1], [0], [0], [1], [0, 0, 1, 1], [], []>} : vector<16x72xf32>, vector<72x256xf32>, vector<16x256xf32> -> vector<16x256xf32>
    %c0_118 = arith.constant 0 : index
    %c0_119 = arith.constant 0 : index
    %137 = vector.load %arg6[%c0_118, %c0_119] : memref<16x1xf32, #tpu.memory_space<vmem>>, vector<16x1xf32>
    %138 = vector.broadcast %137 : vector<16x1xf32> to vector<16x256xf32>
    %139 = arith.mulf %136, %138 : vector<16x256xf32>
    %c0_120 = arith.constant 0 : index
    %c0_121 = arith.constant 0 : index
    %140 = vector.load %arg7[%c0_120, %c0_121] : memref<16x1xf32, #tpu.memory_space<vmem>>, vector<16x1xf32>
    %141 = vector.broadcast %140 : vector<16x1xf32> to vector<16x256xf32>
    %142 = arith.addf %139, %141 : vector<16x256xf32>
    %cst_122 = arith.constant 0.000000e+00 : f32
    %143 = vector.broadcast %cst_122 : f32 to vector<16x256xf32>
    %144 = arith.maximumf %142, %143 : vector<16x256xf32>
    %145 = vector.extract_strided_slice %144 {offsets = [0, 0], sizes = [16, 245], strides = [1, 1]} : vector<16x256xf32> to vector<16x245xf32>
    %146 = vector.extract_strided_slice %144 {offsets = [0, 1], sizes = [16, 245], strides = [1, 1]} : vector<16x256xf32> to vector<16x245xf32>
    %147 = arith.maximumf %145, %146 : vector<16x245xf32>
    %148 = vector.extract_strided_slice %144 {offsets = [0, 10], sizes = [16, 245], strides = [1, 1]} : vector<16x256xf32> to vector<16x245xf32>
    %149 = vector.extract_strided_slice %144 {offsets = [0, 11], sizes = [16, 245], strides = [1, 1]} : vector<16x256xf32> to vector<16x245xf32>
    %150 = arith.maximumf %148, %149 : vector<16x245xf32>
    %151 = arith.maximumf %147, %150 : vector<16x245xf32>
    %c0_123 = arith.constant 0 : index
    %c0_124 = arith.constant 0 : index
    %152 = vector.load %arg8[%c0_123, %c0_124] : memref<89x16xi8, #tpu.memory_space<vmem>>, vector<89x16xi8>
    %153 = arith.sitofp %152 : vector<89x16xi8> to vector<89x16xf32>
    %154 = vector.extract_strided_slice %151 {offsets = [0, 0], sizes = [16, 89], strides = [1, 1]} : vector<16x245xf32> to vector<16x89xf32>
    %cst_125 = arith.constant dense<0.000000e+00> : vector<16x16xf32>
    %155 = tpu.matmul %154, %153, %cst_125 {dimension_numbers = #tpu.dot_dimension_numbers<[1], [0], [0], [1], [0, 0, 1, 1], [], []>} : vector<16x89xf32>, vector<89x16xf32>, vector<16x16xf32> -> vector<16x16xf32>
    %c0_126 = arith.constant 0 : index
    %c0_127 = arith.constant 0 : index
    %c0_128 = arith.constant 0 : index
    %156 = vector.load %arg9[%c0_126, %c0_127, %c0_128] : memref<2x16x16xf32, #tpu.memory_space<vmem>>, vector<1x16x16xf32>
    %157 = vector.shape_cast %156 : vector<1x16x16xf32> to vector<16x16xf32>
    %158 = vector.shape_cast %155 : vector<16x16xf32> to vector<1x16x16xf32>
    tpu.vector_store %arg9[%c0_126, %c0_127, %c0_128], %158 {strides = array<i32>} : memref<2x16x16xf32, #tpu.memory_space<vmem>>, vector<1x16x16xf32>,
    %159 = vector.extract_strided_slice %151 {offsets = [0, 128], sizes = [16, 89], strides = [1, 1]} : vector<16x245xf32> to vector<16x89xf32>
    %cst_129 = arith.constant dense<0.000000e+00> : vector<16x16xf32>
    %160 = tpu.matmul %159, %153, %cst_129 {dimension_numbers = #tpu.dot_dimension_numbers<[1], [0], [0], [1], [0, 0, 1, 1], [], []>} : vector<16x89xf32>, vector<89x16xf32>, vector<16x16xf32> -> vector<16x16xf32>
    %c1_130 = arith.constant 1 : index
    %c0_131 = arith.constant 0 : index
    %c0_132 = arith.constant 0 : index
    %161 = vector.load %arg9[%c1_130, %c0_131, %c0_132] : memref<2x16x16xf32, #tpu.memory_space<vmem>>, vector<1x16x16xf32>
    %162 = vector.shape_cast %161 : vector<1x16x16xf32> to vector<16x16xf32>
    %163 = vector.shape_cast %160 : vector<16x16xf32> to vector<1x16x16xf32>
    tpu.vector_store %arg9[%c1_130, %c0_131, %c0_132], %163 {strides = array<i32>} : memref<2x16x16xf32, #tpu.memory_space<vmem>>, vector<1x16x16xf32>,
    return
  }
}

</mosaic_0001>

<bundles_post_ra>
// kernel: feature_extractor_forward.1
= control target key start
LH: loop header
LB: loop body
LE: loop exit
PB: predicated region body
PF: predicated region fallthrough
CT: control target
= control target key end

     0   :  { %v2645_v1 = vmov 0.0   ;;  %s2646_s11 = smov 52   ;;  %s2647_s12 = smov 48   ;;  %vm69_vm0 = vcmask 125952   ;;  %vm74_vm1 = vcmask 273552   ;;  %vm79_vm2 = vcmask 421152   ;;  %s3366_s0 = inlined_call_operand.vmem [shape: f32[2,4,256], index: 0, kind: input, shape index: {}]   ;;  %s3367_s2 = inlined_call_operand.vmem [shape: f32[8,1], index: 2, kind: input, shape index: {}]   ;;  %s3368_s3 = inlined_call_operand.vmem [shape: f32[8,1], index: 3, kind: input, shape index: {}]   ;;  %s3369_s1 = inlined_call_operand.vmem [shape: f32[8,72], index: 1, kind: input, shape index: {}]   ;;  %s3370_s4 = inlined_call_operand.vmem [shape: s8[305,128], index: 4, kind: input, shape index: {}]   ;;  %s3371_s6 = inlined_call_operand.vmem [shape: f32[16,1], index: 6, kind: input, shape index: {}]   ;;  %s3372_s7 = inlined_call_operand.vmem [shape: f32[16,1], index: 7, kind: input, shape index: {}]   ;;  %s3373_s5 = inlined_call_operand.vmem [shape: f32[16,72], index: 5, kind: input, shape index: {}]   ;;  %s3374_s8 = inlined_call_operand.vmem [shape: s8[89,16], index: 8, kind: input, shape index: {}]   ;;  %s3375_s9 = inlined_call_operand.vmem [shape: f32[2,16,16], index: 9, kind: output, shape index: {}]  }
   0x1   :  { %v39_v0 = vld [vmem:[%s3366_s0] sm:$0xff]  ;;  %33 = vst [vmem:[#allocation2 + $0x8] sm:$0xff] %v2645_v1  ;;  %32 = vst [vmem:[#allocation2] sm:$0xff] %v2645_v1  ;;  %704 = vmatprep.mubr.f32.mxu0 %v2645_v1  ;;  %775 = vmatprep.mubr.f32.mxu1 %v2645_v1  ;;  %s2648_s13 = smov 50   ;;  %s2649_s14 = smov 54   ;;  %v1914_v3 = vld [vmem:[%s3366_s0 + $0x8] sm:$0xff] }
   0x2   :  { %34 = vst [vmem:[#allocation2 + $0x10] sm:$0xff] %v2645_v1  ;;  %35 = vst [vmem:[#allocation2 + $0x18] sm:$0xff] %v2645_v1  ;;  %76 = vrot.lane.b32.xlu1 %v39_v0, %s2646_s11  ;;  %66 = vrot.lane.b32.xlu0 %v39_v0, %s2647_s12  ;;  %v81_v2 = vcombine.high %v39_v0, %v39_v0  ;;  %s2650_s15 = smov 38   ;;  %s2651_s16 = smov 56   ;;  %v159_v4 = vcombine.high %v1914_v3, %v1914_v3  ;;  %vm85_vm3 = vcmask 568752   ;;  %vm44_vm4 = vcmask 437552  }
   0x3   :  { %36 = vst [vmem:[#allocation2 + $0x20] sm:$0xff] %v2645_v1  ;;  %37 = vst [vmem:[#allocation2 + $0x28] sm:$0xff] %v2645_v1  ;;  %s2652_s17 = smov 62   ;;  %s2653_s18 = smov 40   ;;  %vm90_vm5 = vcmask 716352   ;;  %vm107_vm6 = vcmask 109568  }
   0x4   :  { %38 = vst [vmem:[#allocation2 + $0x30] sm:$0xff] %v2645_v1  ;;  %s2654_s19 = smov 58   ;;  %s2655_s20 = smov 64   ;;  %vm49_vm7 = vcmask 585152   ;;  %vm95_vm8 = vcmask 863952   ;;  %vm3376_vm9 = vcmask 257152  }
   0x5   :  { %s2656_s21 = smov 42   ;;  %s2657_s22 = smov 60   ;;  %vm54_vm10 = vcmask 732752   ;;  %vm100_vm11 = vcmask 1011552   ;;  %vm105_vm12 = vcmask 1044464   ;;  %vm117_vm13 = vcmask 404752  }
   0x6   :  { %71 = vrot.lane.b32.xlu0 %v39_v0, %s2648_s13  ;;  %82 = vrot.lane.b32.xlu1 %v81_v2, %s2649_s14  ;;  %s2658_s23 = smov 66   ;;  %s2659_s24 = smov 44   ;;  %vm59_vm14 = vcmask 880352   ;;  %vm122_vm15 = vcmask 552352   ;;  %v2670_v48 = vmov 0   ;;  %v853_v49 = vld [vmem:[%s3367_s2] sm:$0xff] }
   0x7   :  { %s2660_s25 = smov 68   ;;  %s2661_s26 = smov 46   ;;  %2595 = vset.pattern.permute.xlu1 %v2670_v48  ;;  %2596 = vset.pattern.permute.xlu0 %v2670_v48  ;;  %v865_v50 = vld [vmem:[%s3368_s3] sm:$0xff] }
   0x8   :  { %s2662_s0 = smov 127   ;;  %s2663_s29 = smov 110  }
   0x9   :  { %s2664_s30 = smov 126   ;;  %s2665_s10 = smov 108  }
   0xa   :  { %41 = vrot.lane.b32.xlu0 %v39_v0, %s2650_s15  ;;  %87 = vrot.lane.b32.xlu1 %v81_v2, %s2651_s16 }
   0xe   :  { %102 = vrot.lane.b32.xlu0 %v81_v2, %s2652_s17  ;;  %46 = vrot.lane.b32.xlu1 %v39_v0, %s2653_s18 }
  0x12   :  { %92 = vrot.lane.b32.xlu0 %v81_v2, %s2654_s19  ;;  %109 = vrot.lane.b32.xlu1 %v81_v2, %s2655_s20 }
  0x16   :  { %51 = vrot.lane.b32.xlu0 %v39_v0, %s2656_s21  ;;  %97 = vrot.lane.b32.xlu1 %v81_v2, %s2657_s22 }
  0x1a   :  { %114 = vrot.lane.b32.xlu0 %v81_v2, %s2658_s23  ;;  %56 = vrot.lane.b32.xlu1 %v39_v0, %s2659_s24 }
  0x1e   :  { %119 = vrot.lane.b32.xlu0 %v81_v2, %s2660_s25  ;;  %61 = vrot.lane.b32.xlu1 %v39_v0, %s2661_s26 }
  0x22   :  { %147 = vrot.lane.b32.xlu0 %v1914_v3, %s2647_s12  ;;  %151 = vrot.lane.b32.xlu1 %v1914_v3, %s2648_s13  ;;  %s2667_s12 = smov 92   ;;  %s2668_s13 = smov 90  }
  0x26   :  { %155 = vrot.lane.b32.xlu0 %v1914_v3, %s2646_s11  ;;  %127 = vrot.lane.b32.xlu1 %v1914_v3, %s2650_s15  ;;  %s2666_s11 = smov 109  }
  0x2a   :  { %160 = vrot.lane.b32.xlu0 %v159_v4, %s2649_s14  ;;  %131 = vrot.lane.b32.xlu1 %v1914_v3, %s2653_s18  ;;  %s2669_s14 = smov 91  }
  0x2e   :  { %164 = vrot.lane.b32.xlu0 %v159_v4, %s2651_s16  ;;  %135 = vrot.lane.b32.xlu1 %v1914_v3, %s2656_s21  ;;  %s2677_s21 = smov 106  }
  0x32   :  { %168 = vrot.lane.b32.xlu0 %v159_v4, %s2654_s19  ;;  %176 = vrot.lane.b32.xlu1 %v159_v4, %s2652_s17  ;;  %s2675_s19 = smov 116  }
  0x36   :  { %139 = vrot.lane.b32.xlu0 %v1914_v3, %s2659_s24  ;;  %172 = vrot.lane.b32.xlu1 %v159_v4, %s2657_s22 }
  0x3a   :  { %181 = vrot.lane.b32.xlu0 %v159_v4, %s2655_s20  ;;  %143 = vrot.lane.b32.xlu1 %v1914_v3, %s2661_s26  ;;  %s2676_s20 = smov 107  }
  0x3e   :  { %185 = vrot.lane.b32.xlu0 %v159_v4, %s2658_s23  ;;  %189 = vrot.lane.b32.xlu1 %v159_v4, %s2660_s25 }
  0x42   :  { %231 = vrot.lane.b32.xlu1 %v2645_v1, %s2662_s0  ;;  %325 = vrot.lane.b32.xlu0 %v2645_v1, %s2663_s29 }
  0x46   :  { %278 = vrot.lane.b32.xlu1 %v2645_v1, %s2664_s30  ;;  %419 = vrot.lane.b32.xlu0 %v2645_v1, %s2665_s10 }
  0x4a   :  { %372 = vrot.lane.b32.xlu1 %v2645_v1, %s2666_s11 }
  0x74   :  { %v77_v5 = vpop.permute.xlu1 %76  ;;  %v67_v6 = vpop.permute.xlu0 %66 }
  0x75   :  { %70 = vst.msk [vmem:[#allocation2 + $0x8] sm:$0xf] %vm69_vm0, %v67_v6 }
  0x78   :  { %v72_v7 = vpop.permute.xlu0 %71  ;;  %v83_v8 = vpop.permute.xlu1 %82 }
  0x79   :  { %75 = vst.msk [vmem:[#allocation2 + $0x8] sm:$0xf] %vm74_vm1, %v72_v7 }
  0x7a   :  { %80 = vst.msk [vmem:[#allocation2 + $0x8] sm:$0xf] %vm79_vm2, %v77_v5 }
  0x7b   :  { %86 = vst.msk [vmem:[#allocation2 + $0x8] sm:$0xf] %vm85_vm3, %v83_v8 }
  0x7c   :  { %v42_v9 = vpop.permute.xlu0 %41  ;;  %v88_v10 = vpop.permute.xlu1 %87 }
  0x7d   :  { %45 = vst.msk [vmem:[#allocation2] sm:$0xf] %vm44_vm4, %v42_v9 }
  0x7e   :  { %91 = vst.msk [vmem:[#allocation2 + $0x8] sm:$0xf] %vm90_vm5, %v88_v10 }
  0x80   :  { %v103_v11 = vpop.permute.xlu0 %102  ;;  %v47_v12 = vpop.permute.xlu1 %46 }
  0x81   :  { %108 = vst.msk [vmem:[#allocation2 + $0x10] sm:$0xf] %vm107_vm6, %v103_v11 }
  0x82   :  { %50 = vst.msk [vmem:[#allocation2] sm:$0xf] %vm49_vm7, %v47_v12 }
  0x84   :  { %v93_v13 = vpop.permute.xlu0 %92  ;;  %v110_v14 = vpop.permute.xlu1 %109 }
  0x85   :  { %96 = vst.msk [vmem:[#allocation2 + $0x8] sm:$0xf] %vm95_vm8, %v93_v13 }
  0x86   :  { %113 = vst.msk [vmem:[#allocation2 + $0x10] sm:$0xf] %vm3376_vm9, %v110_v14  ;;  %vm64_vm9 = vcmask 1027952  }
  0x88   :  { %v52_v15 = vpop.permute.xlu0 %51  ;;  %v98_v16 = vpop.permute.xlu1 %97 }
  0x89   :  { %55 = vst.msk [vmem:[#allocation2] sm:$0xf] %vm54_vm10, %v52_v15 }
  0x8a   :  { %101 = vst.msk [vmem:[#allocation2 + $0x8] sm:$0xf] %vm100_vm11, %v98_v16 }
  0x8b   :  { %106 = vst.msk [vmem:[#allocation2 + $0x8] sm:$0xf] %vm105_vm12, %v103_v11 }
  0x8c   :  { %v115_v17 = vpop.permute.xlu0 %114  ;;  %v57_v18 = vpop.permute.xlu1 %56 }
  0x8d   :  { %118 = vst.msk [vmem:[#allocation2 + $0x10] sm:$0xf] %vm117_vm13, %v115_v17 }
  0x8e   :  { %60 = vst.msk [vmem:[#allocation2] sm:$0xf] %vm59_vm14, %v57_v18 }
  0x90   :  { %v120_v19 = vpop.permute.xlu0 %119  ;;  %v62_v20 = vpop.permute.xlu1 %61 }
  0x91   :  { %123 = vst.msk [vmem:[#allocation2 + $0x10] sm:$0xf] %vm122_vm15, %v120_v19 }
  0x92   :  { %65 = vst.msk [vmem:[#allocation2] sm:$0xf] %vm64_vm9, %v62_v20  ;;  %v2817_v41 = vld [vmem:[#allocation2 + $0x8] sm:$0xff] }
  0x94   :  { %v148_v21 = vpop.permute.xlu0 %147  ;;  %v152_v22 = vpop.permute.xlu1 %151 }
  0x95   :  { %150 = vst.msk [vmem:[#allocation2 + $0x20] sm:$0xf] %vm69_vm0, %v148_v21  ;;  %vm3377_vm0 = vcmask 257152  }
  0x96   :  { %154 = vst.msk [vmem:[#allocation2 + $0x20] sm:$0xf] %vm74_vm1, %v152_v22  ;;  %vm233_vm1 = vcmask 1039360  }
  0x98   :  { %v156_v23 = vpop.permute.xlu0 %155  ;;  %v128_v24 = vpop.permute.xlu1 %127  ;;  %v2811_v40 = vld [vmem:[#allocation2 + $0x10] sm:$0xff] }
  0x99   :  { %158 = vst.msk [vmem:[#allocation2 + $0x20] sm:$0xf] %vm79_vm2, %v156_v23  ;;  %v2800_v37 = vld [vmem:[#allocation2] sm:$0xff]  ;;  %v2520_v42 = vpack.i.bf16 %v2811_v40, %v2817_v41  ;;  %vm280_vm2 = vcmask 1031168  }
  0x9a   :  { %130 = vst.msk [vmem:[#allocation2 + $0x18] sm:$0xf] %vm44_vm4, %v128_v24  ;;  %vm374_vm4 = vcmask 891904  }
  0x9c   :  { %v161_v25 = vpop.permute.xlu0 %160  ;;  %v132_v26 = vpop.permute.xlu1 %131 }
  0x9d   :  { %163 = vst.msk [vmem:[#allocation2 + $0x20] sm:$0xf] %vm85_vm3, %v161_v25  ;;  %vm327_vm3 = vcmask 900096  }
  0x9e   :  { %134 = vst.msk [vmem:[#allocation2 + $0x18] sm:$0xf] %vm49_vm7, %v132_v26  ;;  %vm515_vm7 = vcmask 744448  }
  0xa0   :  { %v165_v27 = vpop.permute.xlu0 %164  ;;  %v136_v28 = vpop.permute.xlu1 %135 }
  0xa1   :  { %167 = vst.msk [vmem:[#allocation2 + $0x20] sm:$0xf] %vm90_vm5, %v165_v27  ;;  %vm421_vm5 = vcmask 883712  }
  0xa2   :  { %138 = vst.msk [vmem:[#allocation2 + $0x18] sm:$0xf] %vm54_vm10, %v136_v28  ;;  %vm1077_vm10 = vcmask 1040384  }
  0xa4   :  { %v169_v29 = vpop.permute.xlu0 %168  ;;  %v177_v30 = vpop.permute.xlu1 %176 }
  0xa5   :  { %171 = vst.msk [vmem:[#allocation2 + $0x20] sm:$0xf] %vm95_vm8, %v169_v29  ;;  %vm562_vm8 = vcmask 736256  }
  0xa6   :  { %180 = vst.msk [vmem:[#allocation2 + $0x28] sm:$0xf] %vm107_vm6, %v177_v30  ;;  %vm468_vm6 = vcmask 752640  }
  0xa8   :  { %v140_v31 = vpop.permute.xlu0 %139  ;;  %v173_v32 = vpop.permute.xlu1 %172 }
  0xa9   :  { %142 = vst.msk [vmem:[#allocation2 + $0x18] sm:$0xf] %vm59_vm14, %v140_v31  ;;  %vm1456_vm14 = vcmask 949248  }
  0xaa   :  { %175 = vst.msk [vmem:[#allocation2 + $0x20] sm:$0xf] %vm100_vm11, %v173_v32  ;;  %vm2672_vm11 = vmmov 0  }
  0xab   :  { %179 = vst.msk [vmem:[#allocation2 + $0x20] sm:$0xf] %vm105_vm12, %v177_v30  ;;  %vm1073_vm12 = vcmask 400384  }
  0xac   :  { %v182_v33 = vpop.permute.xlu0 %181  ;;  %v144_v34 = vpop.permute.xlu1 %143 }
  0xad   :  { %184 = vst.msk [vmem:[#allocation2 + $0x28] sm:$0xf] %vm3377_vm0, %v182_v33  ;;  %vm1493_vm0 = vcmask 875520  }
  0xae   :  { %146 = vst.msk [vmem:[#allocation2 + $0x18] sm:$0xf] %vm64_vm9, %v144_v34  ;;  %vm636_vm9 = vcmask 588800  }
  0xb0   :  { %v186_v35 = vpop.permute.xlu0 %185  ;;  %v190_v36 = vpop.permute.xlu1 %189 }
  0xb1   :  { %188 = vst.msk [vmem:[#allocation2 + $0x28] sm:$0xf] %vm117_vm13, %v186_v35  ;;  %vm1418_vm13 = vcmask 965632  }
  0xb2   :  { %192 = vst.msk [vmem:[#allocation2 + $0x28] sm:$0xf] %vm122_vm15, %v190_v36  ;;  %v2835_v45 = vld [vmem:[#allocation2 + $0x20] sm:$0xff]  ;;  %vm1437_vm15 = vcmask 957440  }
  0xb4   :  { %v2863_v51 = vpop.permute.xlu1 %231  ;;  %v2865_v52 = vpop.permute.xlu0 %325 }
  0xb5   :  { %v2802_v38 = vld [vmem:[#allocation2 + $0x18] sm:$0xff] }
  0xb6   :  { %v2495_v39 = vpack.i.bf16 %v2802_v38, %v2800_v37  ;;  %v2590_v47 = vpack.i.bf16 %v2835_v45, %v2802_v38 }
  0xb8   :  { %2496 = vrot.lane.b32.xlu0 %v2495_v39, %s2664_s30  ;;  %2491 = vrot.lane.b32.xlu1 %v2495_v39, %s2662_s0  ;;  %v2867_v53 = vpop.permute.xlu1 %278  ;;  %v2869_v54 = vpop.permute.xlu0 %419 }
  0xb9   :  { %v2828_v43 = vld [vmem:[#allocation2 + $0x28] sm:$0xff] }
  0xba   :  { %v2555_v44 = vpack.i.bf16 %v2645_v1, %v2828_v43  ;;  %v2565_v46 = vpack.i.bf16 %v2828_v43, %v2835_v45 }
  0xbc   :  { %2506 = vrot.lane.b32.xlu0 %v2495_v39, %s2666_s11  ;;  %2501 = vrot.lane.b32.xlu1 %v2495_v39, %s2663_s29  ;;  %v2871_v55 = vpop.permute.xlu1 %372 }
  0xc0   :  { %2516 = vrot.lane.b32.xlu0 %v2495_v39, %s2667_s12  ;;  %2511 = vrot.lane.b32.xlu1 %v2495_v39, %s2665_s10 }
  0xc4   :  { %548 = vrot.lane.b32.xlu0 %v2800_v37, %s2668_s13  ;;  %501 = vrot.lane.b32.xlu1 %v2800_v37, %s2669_s14 }
  0xc8   :  { %2521 = vrot.lane.b32.xlu0 %v2520_v42, %s2662_s0  ;;  %552 = vrot.lane.b32.xlu1 %v2811_v40, %s2668_s13 }
  0xcc   :  { %2526 = vrot.lane.b32.xlu0 %v2520_v42, %s2664_s30  ;;  %2531 = vrot.lane.b32.xlu1 %v2520_v42, %s2663_s29 }
  0xd0   :  { %2536 = vrot.lane.b32.xlu0 %v2520_v42, %s2666_s11  ;;  %2541 = vrot.lane.b32.xlu1 %v2520_v42, %s2665_s10 }
  0xd4   :  { %2546 = vrot.lane.b32.xlu0 %v2520_v42, %s2667_s12  ;;  %2551 = vrot.lane.b32.xlu1 %v2520_v42, %s2669_s14 }
  0xd8   :  { %466 = vrot.lane.b32.xlu1 %v2645_v1, %s2667_s12  ;;  %2556 = vrot.lane.b32.xlu0 %v2555_v44, %s2669_s14 }
  0xdc   :  { %2566 = vrot.lane.b32.xlu1 %v2565_v46, %s2664_s30  ;;  %2561 = vrot.lane.b32.xlu0 %v2565_v46, %s2662_s0 }
  0xe0   :  { %2576 = vrot.lane.b32.xlu1 %v2565_v46, %s2666_s11  ;;  %550 = vrot.lane.b32.xlu0 %v2817_v41, %s2668_s13 }
  0xe4   :  { %2586 = vrot.lane.b32.xlu1 %v2565_v46, %s2667_s12  ;;  %2571 = vrot.lane.b32.xlu0 %v2565_v46, %s2663_s29 }
  0xe8   :  { %554 = vrot.lane.b32.xlu1 %v2802_v38, %s2668_s13  ;;  %2581 = vrot.lane.b32.xlu0 %v2565_v46, %s2665_s10 }
  0xec   :  { %558 = vrot.lane.b32.xlu1 %v2828_v43, %s2668_s13  ;;  %2591 = vrot.lane.b32.xlu0 %v2590_v47, %s2669_s14 }
  0xf0   :  { %556 = vrot.lane.b32.xlu0 %v2835_v45, %s2668_s13  ;;  %856 = vperm.xlu1 %2595, %v853_v49  }
  0xf4   :  { %560 = vrot.lane.b32.xlu0 %v2645_v1, %s2668_s13 }
  0xf8   :  { %868 = vperm.xlu0 %2596, %v865_v50  }
 0x12a   :  { %v2873_v56 = vpop.permute.xlu0 %2496  ;;  %v2875_v57 = vpop.permute.xlu1 %2491 }
 0x12b   :  { %v2493_v3 = vunpack.i.l.bf16 %v2875_v57  ;;  %v2498_v8 = vunpack.i.l.bf16 %v2873_v56 }
 0x12e   :  { %v2877_v58 = vpop.permute.xlu0 %2506  ;;  %v2879_v59 = vpop.permute.xlu1 %2501 }
 0x12f   :  { %v2503_v9 = vunpack.i.l.bf16 %v2879_v59  ;;  %v2508_v22 = vunpack.i.l.bf16 %v2877_v58 }
 0x132   :  { %v2881_v60 = vpop.permute.xlu0 %2516  ;;  %v2883_v61 = vpop.permute.xlu1 %2511 }
 0x133   :  { %v2513_v23 = vunpack.i.l.bf16 %v2883_v61  ;;  %v2518_v36 = vunpack.i.l.bf16 %v2881_v60 }
 0x136   :  { %v2885_v62 = vpop.permute.xlu0 %548  ;;  %v502_v63 = vpop.permute.xlu1 %501 }
 0x13a   :  { %v2887_v0 = vpop.permute.xlu0 %2521  ;;  %v2889_v2 = vpop.permute.xlu1 %552 }
 0x13b   :  { %v2524_v4 = vunpack.i.h.bf16 %v2887_v0  ;;  %v2523_v5 = vunpack.i.l.bf16 %v2887_v0 }
 0x13d   :  { %v235_v6 = vsel %vm233_vm1, %v2523_v5, %v2524_v4  ;;  %v234_v7 = vsel %vm233_vm1, %v2493_v3, %v2523_v5 }
 0x13e   :  { %v2900_v10 = vpop.permute.xlu0 %2526  ;;  %v2902_v11 = vpop.permute.xlu1 %2531  ;;  %v2230_v12 = vpack.c.bf16 %v235_v6, %v2817_v41  ;;  %v2232_v13 = vpack.c.bf16 %v234_v7, %v2800_v37 }
 0x13f   :  { %v2529_v14 = vunpack.i.h.bf16 %v2900_v10  ;;  %v2528_v15 = vunpack.i.l.bf16 %v2900_v10  ;;  %v2534_v16 = vunpack.i.h.bf16 %v2902_v11  ;;  %v2533_v17 = vunpack.i.l.bf16 %v2902_v11 }
 0x140   :  { %2231 = vmatprep.subr.bf16.mxu0 %v2230_v12  ;;  %v2494_v12 = vunpack.i.h.bf16 %v2875_v57  ;;  %v2514_v10 = vunpack.i.h.bf16 %v2883_v61 }
 0x141   :  { %2233 = vmatpush1.bf16.msra.mxu0 %v2232_v13  ;;  %v282_v18 = vsel %vm280_vm2, %v2528_v15, %v2529_v14  ;;  %v329_v19 = vsel %vm327_vm3, %v2533_v17, %v2534_v16  ;;  %v281_v20 = vsel %vm280_vm2, %v2498_v8, %v2528_v15  ;;  %v328_v21 = vsel %vm327_vm3, %v2503_v9, %v2533_v17 }
 0x142   :  { %v2920_v24 = vpop.permute.xlu0 %2536  ;;  %v2922_v25 = vpop.permute.xlu1 %2541  ;;  %v2234_v26 = vpack.c.bf16 %v329_v19, %v282_v18  ;;  %v2236_v27 = vpack.c.bf16 %v328_v21, %v281_v20  ;;  %v236_v19 = vsel %vm233_vm1, %v2524_v4, %v2494_v12  ;;  %v2504_v20 = vunpack.i.h.bf16 %v2879_v59  ;;  %v2976_v59 = vld [vmem:[%s3369_s1] sm:$0xff] }
 0x143   :  { %v2539_v28 = vunpack.i.h.bf16 %v2920_v24  ;;  %v2538_v29 = vunpack.i.l.bf16 %v2920_v24  ;;  %v2544_v30 = vunpack.i.h.bf16 %v2922_v25  ;;  %v2543_v31 = vunpack.i.l.bf16 %v2922_v25 }
 0x144   :  { %2235 = vmatprep.subr.bf16.mxu0 %v2234_v26  ;;  %v2248_v0 = vpack.c.bf16 %v236_v19, %v2811_v40  ;;  %v2509_v40 = vunpack.i.h.bf16 %v2877_v58 }
 0x145   :  { %2237 = vmatpush1.bf16.msra.mxu0 %v2236_v27  ;;  %v376_v32 = vsel %vm374_vm4, %v2538_v29, %v2539_v28  ;;  %v423_v33 = vsel %vm421_vm5, %v2543_v31, %v2544_v30  ;;  %v375_v34 = vsel %vm374_vm4, %v2508_v22, %v2538_v29  ;;  %v422_v35 = vsel %vm421_vm5, %v2513_v23, %v2543_v31 }
 0x146   :  { %v2937_v37 = vpop.permute.xlu0 %2546  ;;  %v2939_v39 = vpop.permute.xlu1 %2551  ;;  %v2238_v41 = vpack.c.bf16 %v423_v33, %v376_v32  ;;  %v2240_v42 = vpack.c.bf16 %v422_v35, %v375_v34  ;;  %v377_v58 = vsel %vm374_vm4, %v2539_v28, %v2509_v40 }
 0x147   :  { %v2549_v44 = vunpack.i.h.bf16 %v2937_v37  ;;  %v2548_v46 = vunpack.i.l.bf16 %v2937_v37  ;;  %v2554_v47 = vunpack.i.h.bf16 %v2939_v39  ;;  %v2553_v48 = vunpack.i.l.bf16 %v2939_v39 }
 0x148   :  { %2239 = vmatprep.subr.bf16.mxu0 %v2238_v41  ;;  %v424_v41 = vsel %vm421_vm5, %v2544_v30, %v2514_v10 }
 0x149   :  { %2241 = vmatpush1.bf16.msra.mxu0 %v2240_v42  ;;  %v470_v49 = vsel %vm468_vm6, %v2548_v46, %v2549_v44  ;;  %v517_v50 = vsel %vm515_vm7, %v2553_v48, %v2554_v47  ;;  %v469_v3 = vsel %vm468_vm6, %v2518_v36, %v2548_v46  ;;  %v516_v5 = vsel %vm515_vm7, %v502_v63, %v2553_v48 }
 0x14a   :  { %v2953_v6 = vpop.permute.xlu0 %2556  ;;  %v2955_v7 = vpop.permute.xlu1 %466  ;;  %v2242_v8 = vpack.c.bf16 %v517_v50, %v470_v49  ;;  %v2244_v9 = vpack.c.bf16 %v516_v5, %v469_v3  ;;  %v2499_v63 = vunpack.i.h.bf16 %v2873_v56 }
 0x14b   :  { %v2559_v48 = vunpack.i.h.bf16 %v2953_v6  ;;  %v2558_v25 = vunpack.i.l.bf16 %v2953_v6 }
 0x14c   :  { %2243 = vmatprep.subr.bf16.mxu0 %v2242_v8 }
 0x14d   :  { %2245 = vmatpush1.bf16.msra.mxu0 %v2244_v9 }
 0x14e   :  { %v2562_v13 = vpop.permute.xlu0 %2561  ;;  %v2567_v15 = vpop.permute.xlu1 %2566 }
 0x14f   :  { %v2564_v17 = vunpack.i.h.bf16 %v2562_v13  ;;  %v2563_v18 = vunpack.i.l.bf16 %v2562_v13  ;;  %v2569_v29 = vunpack.i.h.bf16 %v2567_v15  ;;  %v2568_v31 = vunpack.i.l.bf16 %v2567_v15 }
 0x150   :  { %v2519_v15 = vunpack.i.h.bf16 %v2881_v60 }
 0x151   :  { %v237_v21 = vsel %vm233_vm1, %v2494_v12, %v2563_v18  ;;  %v239_v22 = vsel %vm233_vm1, %v2564_v17, %v2863_v51  ;;  %v238_v57 = vsel %vm233_vm1, %v2563_v18, %v2564_v17  ;;  %v283_v51 = vsel %vm280_vm2, %v2529_v14, %v2499_v63 }
 0x152   :  { %v551_v23 = vpop.permute.xlu0 %550  ;;  %v2577_v26 = vpop.permute.xlu1 %2576  ;;  %v2246_v27 = vpack.c.bf16 %v237_v21, %v2802_v38  ;;  %v330_v38 = vsel %vm327_vm3, %v2534_v16, %v2504_v20  ;;  %v2264_v32 = vpack.c.bf16 %v238_v57, %v2835_v45  ;;  %v285_v45 = vsel %vm280_vm2, %v2568_v31, %v2569_v29 }
 0x153   :  { %v564_v4 = vsel %vm562_vm8, %v551_v23, %v2889_v2  ;;  %v563_v56 = vsel %vm562_vm8, %v2885_v62, %v551_v23  ;;  %v2262_v62 = vpack.c.bf16 %v239_v22, %v2828_v43  ;;  %v2252_v11 = vpack.c.bf16 %v330_v38, %v283_v51 }
 0x154   :  { %656 = vmatprep.subr.mxu0 %v564_v4  ;;  %2247 = vmatprep.subr.bf16.mxu1 %v2246_v27  ;;  %v2579_v16 = vunpack.i.h.bf16 %v2577_v26  ;;  %v2578_v34 = vunpack.i.l.bf16 %v2577_v26  ;;  %v284_v36 = vsel %vm280_vm2, %v2499_v63, %v2568_v31  ;;  %v286_v42 = vsel %vm280_vm2, %v2569_v29, %v2867_v53 }
 0x155   :  { %657 = vmatpush1.msra.mxu0 %v563_v56  ;;  %2249 = vmatpush1.bf16.msra.mxu1 %v2248_v0  ;;  %v2256_v22 = vpack.c.bf16 %v424_v41, %v377_v58  ;;  %v471_v60 = vsel %vm468_vm6, %v2549_v44, %v2519_v15 }
 0x156   :  { %v2572_v33 = vpop.permute.xlu0 %2571  ;;  %v2587_v14 = vpop.permute.xlu1 %2586  ;;  %2263 = vmatprep.subr.bf16.mxu0 %v2262_v62  ;;  %1915 = vmatmul.mubr.msk.f32.vlgmr.msra.gmra.mrb[0].mxu0 %vm636_vm9, %v2976_v59  ;;  %v379_v30 = vsel %vm374_vm4, %v2578_v34, %v2579_v16  ;;  %v378_v53 = vsel %vm374_vm4, %v2509_v40, %v2578_v34 }
 0x157   :  { %v2574_v43 = vunpack.i.h.bf16 %v2572_v33  ;;  %v2573_v35 = vunpack.i.l.bf16 %v2572_v33  ;;  %2265 = vmatpush1.bf16.msra.mxu0 %v2264_v32  ;;  %846 = vmatprep.mubr.f32.mxu0 %v2645_v1  ;;  %v2589_v61 = vunpack.i.h.bf16 %v2587_v14  ;;  %v2588_v12 = vunpack.i.l.bf16 %v2587_v14 }
 0x159   :  { %v332_v24 = vsel %vm327_vm3, %v2573_v35, %v2574_v43  ;;  %v331_v28 = vsel %vm327_vm3, %v2504_v20, %v2573_v35  ;;  %v333_v46 = vsel %vm327_vm3, %v2574_v43, %v2865_v52  ;;  %v380_v52 = vsel %vm374_vm4, %v2579_v16, %v2871_v55 }
 0x15a   :  { %v2268_v49 = vpack.c.bf16 %v332_v24, %v285_v45  ;;  %v2582_v50 = vpop.permute.xlu0 %2581  ;;  %v2250_v3 = vpack.c.bf16 %v331_v28, %v284_v36  ;;  %v2266_v5 = vpack.c.bf16 %v333_v46, %v286_v42  ;;  %v474_v13 = vsel %vm468_vm6, %v2589_v61, %v2955_v7  ;;  %v555_v26 = vpop.permute.xlu1 %554 }
 0x15b   :  { %v2584_v8 = vunpack.i.h.bf16 %v2582_v50  ;;  %v2583_v9 = vunpack.i.l.bf16 %v2582_v50  ;;  %v521_v7 = vsel %vm515_vm7, %v2558_v25, %v2559_v48  ;;  %v473_v23 = vsel %vm468_vm6, %v2588_v12, %v2589_v61 }
 0x15c   :  { %2251 = vmatprep.subr.bf16.mxu1 %v2250_v3  ;;  %2267 = vmatprep.subr.bf16.mxu0 %v2266_v5  ;;  %v2274_v27 = vpack.c.bf16 %v521_v7, %v474_v13  ;;  %v565_v39 = vsel %vm562_vm8, %v2889_v2, %v555_v26  ;;  %v3131_v7 = vld [vmem:[%s3370_s4 + $0x30] sm:$0xff]  }
 0x15d   :  { %v426_v17 = vsel %vm421_vm5, %v2583_v9, %v2584_v8  ;;  %2253 = vmatpush1.bf16.msra.mxu1 %v2252_v11  ;;  %2269 = vmatpush1.bf16.msra.mxu0 %v2268_v49  ;;  %v425_v6 = vsel %vm421_vm5, %v2514_v10, %v2583_v9  ;;  %v427_v18 = vsel %vm421_vm5, %v2584_v8, %v2869_v54  ;;  %v3075_v8 = vld [vmem:[%s3370_s4 + $0x20] sm:$0xff]  }
 0x15e   :  { %v2272_v19 = vpack.c.bf16 %v426_v17, %v379_v30  ;;  %v2592_v63 = vpop.permute.xlu0 %2591  ;;  %v2254_v20 = vpack.c.bf16 %v425_v6, %v378_v53  ;;  %v2270_v21 = vpack.c.bf16 %v427_v18, %v380_v52  ;;  %v472_v54 = vsel %vm468_vm6, %v2519_v15, %v2588_v12  ;;  %v559_v29 = vpop.permute.xlu1 %558  ;;  %v3080_v9 = vld [vmem:[%s3370_s4] sm:$0xff]   ;;  %v3095_v17 = vld [vmem:[%s3370_s4 + $0x28] sm:$0xff]  }
 0x15f   :  { %v2594_v55 = vunpack.i.h.bf16 %v2592_v63  ;;  %v2593_v57 = vunpack.i.l.bf16 %v2592_v63  ;;  %v2671_v12 = vmov 0.0|0.0   ;;  %v2278_v53 = vunpack.c.l.s8.bf16 %v3075_v8  ;;  %v3090_v15 = vld [vmem:[%s3370_s4 + $0x40] sm:$0xff]  }
 0x160   :  { %2255 = vmatprep.subr.bf16.mxu1 %v2254_v20  ;;  %2271 = vmatprep.subr.bf16.mxu0 %v2270_v21  ;;  %v2280_v52 = vunpack.c.l.s8.bf16 %v3080_v9  ;;  %v2282_v13 = vunpack.c.h.s8.bf16 %v3075_v8  ;;  %v2446_v6 = vunpack.c.l.s8.bf16 %v3090_v15  ;;  %v2284_v18 = vunpack.c.h.s8.bf16 %v3080_v9  ;;  %v3110_v20 = vld [vmem:[%s3370_s4 + $0x8] sm:$0xff]   ;;  %v3241_v9 = vld [vmem:[#allocation2 + $0x30] sm:$0xff] }
 0x161   :  { %v520_v0 = vsel %vm515_vm7, %v2594_v55, %v2558_v25  ;;  %2257 = vmatpush1.bf16.msra.mxu1 %v2256_v22  ;;  %2273 = vmatpush1.bf16.msra.mxu0 %v2272_v19  ;;  %v519_v4 = vsel %vm515_vm7, %v2593_v57, %v2594_v55  ;;  %v518_v37 = vsel %vm515_vm7, %v2554_v47, %v2593_v57  ;;  %v2447_v19 = vunpack.c.h.s8.bf16 %v3090_v15  ;;  %v3116_v21 = vld [vmem:[%s3370_s4 + $0x48] sm:$0xf]  }
 0x162   :  { %v2276_v56 = vpack.c.bf16 %v520_v0, %v473_v23  ;;  %v557_v44 = vpop.permute.xlu0 %556  ;;  %2275 = vmatprep.subr.bf16.mxu0 %v2274_v27  ;;  %v2258_v51 = vpack.c.bf16 %v519_v4, %v472_v54  ;;  %v2260_v38 = vpack.c.bf16 %v518_v37, %v471_v60  ;;  %v2286_v63 = vunpack.c.l.s8.bf16 %v3095_v17  ;;  %v991_v54 = vld [vmem:[%s3370_s4 + $0x4c] sm:$0x1] }
 0x163   :  { %v566_v40 = vsel %vm562_vm8, %v555_v26, %v557_v44  ;;  %v567_v32 = vsel %vm562_vm8, %v557_v44, %v559_v29  ;;  %v2288_v22 = vunpack.c.l.s8.bf16 %v3110_v20  ;;  %v2448_v55 = vunpack.c.l.s8.bf16 %v3116_v21  ;;  %v3144_v26 = vld [vmem:[%s3370_s4 + $0x10] sm:$0xff]  }
 0x164   :  { %2259 = vmatprep.subr.bf16.mxu1 %v2258_v51  ;;  %v2290_v57 = vunpack.c.h.s8.bf16 %v3095_v17  ;;  %v2292_v60 = vunpack.c.h.s8.bf16 %v3110_v20  ;;  %v2294_v23 = vunpack.c.l.s8.bf16 %v3131_v7  ;;  %v2296_v27 = vunpack.c.l.s8.bf16 %v3144_v26 }
 0x165   :  { %2261 = vmatpush1.bf16.msra.mxu1 %v2260_v38  ;;  %2277 = vmatpush1.bf16.msra.mxu0 %v2276_v56  ;;  %v1030_v0 = vunpack.c.0.s8 %v991_v54  ;;  %v2298_v4 = vunpack.c.h.s8.bf16 %v3131_v7  ;;  %v2300_v37 = vunpack.c.h.s8.bf16 %v3144_v26  ;;  %v3172_v38 = vld [vmem:[%s3370_s4 + $0x38] sm:$0xff]   ;;  %v1622_v26 = vld [vmem:[%s3371_s6] sm:$0xff]  ;;  %v1623_v54 = vld [vmem:[%s3371_s6 + $0x8] sm:$0xff] }
 0x166   :  { %v561_v31 = vpop.permute.xlu0 %560  ;;  %727 = vmatprep.subr.mxu1 %v566_v40  ;;  %v2302_v40 = vunpack.c.l.s8.bf16 %v3172_v38 }
 0x167   :  { %v568_v62 = vsel %vm562_vm8, %v559_v29, %v561_v31  ;;  %v3159_v56 = vcvt.s32.f32 %v1030_v0  ;;  %v1639_v0 = vld [vmem:[%s3372_s7 + $0x8] sm:$0xff] }
 0x168   :  { %798 = vmatprep.subr.mxu0 %v568_v62 }
 0x169   :  { %728 = vmatpush1.msra.mxu1 %v565_v39  ;;  %799 = vmatpush1.msra.mxu0 %v567_v32 }
 0x16a   :  { %1916 = vmatmul.mubr.msk.f32.vlgmr.msra.gmra.mrb[0].mxu1 %vm636_vm9, %v2976_v59  ;;  %1917 = vmatmul.mubr.msk.f32.vlgmr.msra.gmra.mrb[2].mxu0 %vm636_vm9, %v2976_v59 }
 0x16b   :  { %2310 = vmatprep.subr.bf16.mxu0 %v2671_v12  ;;  %2279 = vmatprep.subr.bf16.mxu1 %v2278_v53 }
 0x16c   :  { %2281 = vmatpush3.bf16.msra.mxu1 %v2280_v52  ;;  %2312 = vmatpush3.bf16.msra.mxu0 %v2446_v6 }
 0x16d   :  { %2283 = vmatprep.subr.bf16.mxu1 %v2282_v13  ;;  %2313 = vmatprep.subr.bf16.mxu0 %v2671_v12 }
 0x16e   :  { %2156 = vmatprep.mubr.msk.f32.mxu0 %vm2672_vm11, %v2645_v1 }
 0x16f   :  { %v857_v33 = vpop.permute.xlu1 %856 }
 0x170   :  { %2285 = vmatpush3.bf16.msra.mxu1 %v2284_v18  ;;  %2315 = vmatpush3.bf16.msra.mxu0 %v2447_v19 }
 0x171   :  { %2287 = vmatprep.subr.bf16.mxu1 %v2286_v63  ;;  %2316 = vmatprep.subr.bf16.mxu0 %v2671_v12 }
 0x174   :  { %2289 = vmatpush3.bf16.msra.mxu1 %v2288_v22  ;;  %2318 = vmatpush3.bf16.msra.mxu0 %v2448_v55 }
 0x175   :  { %2291 = vmatprep.subr.bf16.mxu1 %v2290_v57  ;;  %2154 = vmatprep.subr.mxu0 %v2645_v1  ;;  %v3177_v1 = vld [vmem:[%s3370_s4 + $0x18] sm:$0xff]   ;;  %s2673_s4 = smov 117  }
 0x176   :  { %v2304_v29 = vunpack.c.l.s8.bf16 %v3177_v1 }
 0x177   :  { %v869_v14 = vpop.permute.xlu0 %868 }
 0x178   :  { %2293 = vmatpush3.bf16.msra.mxu1 %v2292_v60  ;;  %2155 = vmatpush3.msk.msra.mxu0 %vm1077_vm10, %v3159_v56 }
 0x179   :  { %2295 = vmatprep.subr.bf16.mxu1 %v2294_v23  ;;  %2320 = vmatprep.subr.bf16.mxu0 %v2278_v53 }
 0x17c   :  { %2297 = vmatpush3.bf16.msra.mxu1 %v2296_v27 }
 0x17d   :  { %2299 = vmatprep.subr.bf16.mxu1 %v2298_v4 }
 0x180   :  { %2301 = vmatpush3.bf16.msra.mxu1 %v2300_v37 }
 0x181   :  { %2303 = vmatprep.subr.bf16.mxu1 %v2302_v40 }
 0x184   :  { %2305 = vmatpush3.bf16.msra.mxu1 %v2304_v29 }
 0x229   :  { %v706_v47 = vpop.f32.mrb[0].mxu0 }
 0x22a   :  { %v708_v10 = vpop.f32.mrb[1].mxu0  ;;  %v859_v34 = vmul.f32 %v857_v33, %v706_v47 }
 0x22b   :  { %v860_v11 = vmul.f32 %v857_v33, %v708_v10 }
 0x22c   :  { %v3042_v28 = vadd.f32 %v869_v14, %v859_v34 }
 0x22d   :  { %v3044_v59 = vadd.f32 %v869_v14, %v860_v11  ;;  %v2308_v11 = vunpack.c.h.s8.bf16 %v3177_v1 }
 0x22e   :  { %v877_v5 = vmax.f32 %v3042_v28, 0.0 }
 0x22f   :  { %v878_v25 = vmax.f32 %v3044_v59, 0.0 }
 0x231   :  { %v2597_v30 = vpack.i.bf16 %v877_v5, %v878_v25 }
 0x23d   :  { %v777_v58 = vpop.f32.mrb[0].mxu1  ;;  %v848_v16 = vpop.f32.mrb[2].mxu0 }
 0x23e   :  { %v861_v43 = vmul.f32 %v857_v33, %v777_v58  ;;  %v863_v35 = vmul.f32 %v857_v33, %v848_v16  ;;  %v779_v45 = vpop.f32.mrb[1].mxu1  ;;  %v850_v2 = vpop.f32.mrb[3].mxu0 }
 0x23f   :  { %v862_v61 = vmul.f32 %v857_v33, %v779_v45  ;;  %v864_v36 = vmul.f32 %v857_v33, %v850_v2  ;;  %v2306_v33 = vunpack.c.h.s8.bf16 %v3172_v38 }
 0x240   :  { %v3038_v41 = vadd.f32 %v869_v14, %v861_v43  ;;  %v3040_v24 = vadd.f32 %v869_v14, %v863_v35 }
 0x241   :  { %v3048_v48 = vadd.f32 %v869_v14, %v862_v61  ;;  %v3050_v49 = vadd.f32 %v869_v14, %v864_v36  ;;  %2307 = vmatprep.subr.bf16.mxu1 %v2306_v33 }
 0x242   :  { %v879_v42 = vmax.f32 %v3038_v41, 0.0  ;;  %v881_v46 = vmax.f32 %v3040_v24, 0.0  ;;  %2309 = vmatpush3.bf16.msra.mxu1 %v2308_v11 }
 0x243   :  { %v880_v50 = vmax.f32 %v3048_v48, 0.0  ;;  %v882_v3 = vmax.f32 %v3050_v49, 0.0  ;;  %2351 = vmatprep.subr.bf16.mxu1 %v2671_v12 }
 0x244   :  { %893 = vrot.lane.b32.xlu1 %v879_v42, %s2662_s0  ;;  %897 = vrot.lane.b32.xlu0 %v881_v46, %s2662_s0 }
 0x248   :  { %895 = vrot.lane.b32.xlu1 %v880_v50, %s2662_s0  ;;  %899 = vrot.lane.b32.xlu0 %v882_v3, %s2662_s0 }
 0x24c   :  { %2598 = vrot.lane.b32.xlu1 %v2597_v30, %s2662_s0 }
 0x2b6   :  { %v894_v44 = vpop.permute.xlu1 %893  ;;  %v898_v51 = vpop.permute.xlu0 %897 }
 0x2ba   :  { %v896_v31 = vpop.permute.xlu1 %895  ;;  %v900_v62 = vpop.permute.xlu0 %899 }
 0x2bb   :  { %v903_v32 = vsel %vm233_vm1, %v894_v44, %v896_v31  ;;  %v904_v39 = vsel %vm233_vm1, %v896_v31, %v898_v51  ;;  %v905_v14 = vsel %vm233_vm1, %v898_v51, %v900_v62  ;;  %v917_v41 = vmax.f32 %v882_v3, %v900_v62 }
 0x2bc   :  { %v914_v47 = vmax.f32 %v879_v42, %v903_v32  ;;  %v3191_v10 = vmax.f32 %v880_v50, %v904_v39  ;;  %v916_v43 = vmax.f32 %v881_v46, %v905_v14 }
 0x2be   :  { %928 = vrot.lane.b32.xlu1 %v914_v47, %s2663_s29  ;;  %v2599_v58 = vpop.permute.xlu1 %2598  ;;  %930 = vrot.lane.b32.xlu0 %v3191_v10, %s2663_s29 }
 0x2bf   :  { %v2601_v16 = vunpack.i.h.bf16 %v2599_v58  ;;  %v2600_v34 = vunpack.i.l.bf16 %v2599_v58 }
 0x2c1   :  { %v901_v35 = vsel %vm233_vm1, %v2601_v16, %v2600_v34  ;;  %v902_v45 = vsel %vm233_vm1, %v2600_v34, %v894_v44 }
 0x2c2   :  { %932 = vrot.lane.b32.xlu0 %v916_v43, %s2663_s29  ;;  %v912_v2 = vmax.f32 %v877_v5, %v901_v35  ;;  %v913_v61 = vmax.f32 %v878_v25, %v902_v45 }
 0x2c4   :  { %v2602_v36 = vpack.i.bf16 %v912_v2, %v913_v61 }
 0x2c6   :  { %2603 = vrot.lane.b32.xlu1 %v2602_v36, %s2663_s29 }
 0x2ca   :  { %934 = vrot.lane.b32.xlu1 %v917_v41, %s2663_s29  ;;  %s2674_s29 = smov 118  }
 0x330   :  { %v929_v24 = vpop.permute.xlu1 %928  ;;  %v931_v42 = vpop.permute.xlu0 %930 }
 0x331   :  { %v938_v46 = vsel %vm327_vm3, %v929_v24, %v931_v42 }
 0x332   :  { %v949_v48 = vmax.f32 %v914_v47, %v938_v46 }
 0x334   :  { %2157 = vmatmul.mubr.msk.f32.vlgmr.msra.gmra.mrb[4].mxu0 %vm1073_vm12, %v949_v48  ;;  %v933_v5 = vpop.permute.xlu0 %932 }
 0x335   :  { %2322 = vmatpush3.bf16.msra.mxu0 %v2280_v52 }
 0x336   :  { %2324 = vmatprep.subr.bf16.mxu0 %v2282_v13 }
 0x338   :  { %v2604_v28 = vpop.permute.xlu1 %2603 }
 0x339   :  { %v2606_v59 = vunpack.i.h.bf16 %v2604_v28  ;;  %v2605_v49 = vunpack.i.l.bf16 %v2604_v28  ;;  %2326 = vmatpush3.bf16.msra.mxu0 %v2284_v18 }
 0x33a   :  { %2328 = vmatprep.subr.bf16.mxu0 %v2286_v63 }
 0x33b   :  { %v936_v50 = vsel %vm327_vm3, %v2606_v59, %v2605_v49  ;;  %v937_v3 = vsel %vm327_vm3, %v2605_v49, %v929_v24 }
 0x33c   :  { %v947_v25 = vmax.f32 %v912_v2, %v936_v50  ;;  %v935_v30 = vpop.permute.xlu1 %934  ;;  %v948_v53 = vmax.f32 %v913_v61, %v937_v3 }
 0x33d   :  { %v940_v8 = vsel %vm327_vm3, %v933_v5, %v935_v30  ;;  %2330 = vmatpush3.bf16.msra.mxu0 %v2288_v22  ;;  %v952_v13 = vmax.f32 %v917_v41, %v935_v30 }
 0x33e   :  { %v951_v52 = vmax.f32 %v916_v43, %v940_v8  ;;  %1145 = vmatprep.mubr.f32.mxu1 %v948_v53  ;;  %2332 = vmatprep.subr.bf16.mxu0 %v2290_v57 }
 0x33f   :  { %1146 = vmatmul.mubr.f32.vlgmr.msra.gmra.mrb[2].mxu1 %v947_v25 }
 0x340   :  { %2353 = vmatpush3.bf16.msra.mxu1 %v2446_v6  ;;  %1289 = vmatprep.mubr.f32.mxu0 %v951_v52 }
 0x341   :  { %2334 = vmatpush3.bf16.msra.mxu0 %v2292_v60  ;;  %2354 = vmatprep.subr.bf16.mxu1 %v2671_v12 }
 0x342   :  { %2336 = vmatprep.subr.bf16.mxu0 %v2294_v23  ;;  %2173 = vmatprep.mubr.msk.f32.mxu1 %vm2672_vm11, %v3241_v9 }
 0x344   :  { %2356 = vmatpush3.bf16.msra.mxu1 %v2447_v19 }
 0x345   :  { %2338 = vmatpush3.bf16.msra.mxu0 %v2296_v27  ;;  %2357 = vmatprep.subr.bf16.mxu1 %v2671_v12  ;;  %v939_v12 = vsel %vm327_vm3, %v931_v42, %v933_v5  ;;  %v1638_v27 = vld [vmem:[%s3372_s7] sm:$0xff]  ;;  %vm2678_vm3 = vmmov 1  }
 0x346   :  { %2340 = vmatprep.subr.bf16.mxu0 %v2298_v4  ;;  %v950_v15 = vmax.f32 %v3191_v10, %v939_v12  ;;  %vm2397_vm4 = vmpackc.low %vm1077_vm10, %vm2678_vm3 }
 0x348   :  { %2359 = vmatpush3.bf16.msra.mxu1 %v2448_v55 }
 0x349   :  { %2342 = vmatpush3.bf16.msra.mxu0 %v2300_v37  ;;  %2171 = vmatprep.subr.mxu1 %v3241_v9 }
 0x34a   :  { %2344 = vmatprep.subr.bf16.mxu0 %v2302_v40 }
 0x34c   :  { %2172 = vmatpush3.msk.msra.mxu1 %vm1077_vm10, %v3159_v56 }
 0x34d   :  { %2346 = vmatpush3.bf16.msra.mxu0 %v2304_v29  ;;  %2174 = vmatmul.mubr.msk.f32.vlgmr.msra.gmra.mrb[4].mxu1 %vm1073_vm12, %v952_v13 }
 0x34e   :  { %2348 = vmatprep.subr.bf16.mxu0 %v2306_v33  ;;  %1609 = vmatprep.mubr.f32.mxu1 %v3241_v9 }
 0x351   :  { %2350 = vmatpush3.bf16.msra.mxu0 %v2308_v11 }
 0x354   :  { %1290 = vmatmul.mubr.f32.vlgmr.msra.gmra.mrb[6].mxu0 %v950_v15 }
 0x407   :  { %v1217_v17 = vpop.f32.mrb[4].mxu0 }
 0x408   :  { %v2158_v6 = vpop.f32.mrb[5].mxu0 }
 0x412   :  { %v2060_v18 = vpop.f32.mrb[2].mxu1 }
 0x413   :  { %v2061_v19 = vpop.f32.mrb[3].mxu1 }
 0x414   :  { %v2062_v63 = vadd.f32 %v2061_v19, %v2060_v18 }
 0x416   :  { %v3271_v20 = vadd.f32 %v2062_v63, %v1217_v17 }
 0x418   :  { %1394 = vrot.lane.b32.xlu0 %v3271_v20, %s2664_s30  ;;  %1376 = vrot.lane.b32.xlu1 %v3271_v20, %s2662_s0 }
 0x41c   :  { %1431 = vrot.lane.b32.xlu0 %v3271_v20, %s2673_s4  ;;  %1412 = vrot.lane.b32.xlu1 %v3271_v20, %s2674_s29 }
 0x420   :  { %v1361_v21 = vpop.f32.mrb[4].mxu1  ;;  %1469 = vrot.lane.b32.xlu0 %v3271_v20, %s2665_s10  ;;  %1450 = vrot.lane.b32.xlu1 %v3271_v20, %s2675_s19 }
 0x421   :  { %v2175_v22 = vpop.f32.mrb[5].mxu1 }
 0x427   :  { %v2103_v55 = vpop.f32.mrb[6].mxu0 }
 0x428   :  { %v2104_v57 = vpop.f32.mrb[7].mxu0 }
 0x429   :  { %v2105_v7 = vadd.f32 %v2104_v57, %v2103_v55  ;;  %v1519_v57 = vld [vmem:[%s3373_s5] sm:$0xff] }
 0x42b   :  { %v1362_v60 = vadd.f32 %v2105_v7, %v1361_v21  ;;  %v1520_v7 = vld [vmem:[%s3373_s5 + $0x8] sm:$0xff] }
 0x42d   :  { %v2617_v23 = vpack.i.bf16 %v3241_v9, %v1362_v60 }
 0x42f   :  { %2618 = vrot.lane.b32.xlu1 %v2617_v23, %s2674_s29  ;;  %2608 = vrot.lane.b32.xlu0 %v2617_v23, %s2662_s0 }
 0x433   :  { %2628 = vrot.lane.b32.xlu1 %v2617_v23, %s2675_s19  ;;  %2613 = vrot.lane.b32.xlu0 %v2617_v23, %s2664_s30 }
 0x437   :  { %2638 = vrot.lane.b32.xlu1 %v2617_v23, %s2676_s20  ;;  %2623 = vrot.lane.b32.xlu0 %v2617_v23, %s2673_s4 }
 0x43b   :  { %1487 = vrot.lane.b32.xlu1 %v3271_v20, %s2676_s20  ;;  %2633 = vrot.lane.b32.xlu0 %v2617_v23, %s2665_s10 }
 0x43f   :  { %1510 = vrot.lane.b32.xlu1 %v3241_v9, %s2677_s21  ;;  %1508 = vrot.lane.b32.xlu0 %v1362_v60, %s2677_s21 }
 0x443   :  { %1626 = vperm.xlu1 %2595, %v1622_v26   ;;  %1506 = vrot.lane.b32.xlu0 %v3271_v20, %s2677_s21 }
 0x447   :  { %1642 = vperm.xlu1 %2595, %v1638_v27   ;;  %1631 = vperm.xlu0 %2596, %v1623_v54  }
 0x44b   :  { %1647 = vperm.xlu0 %2596, %v1639_v0  }
 0x48a   :  { %v1377_v4 = vpop.permute.xlu1 %1376  ;;  %v1395_v37 = vpop.permute.xlu0 %1394 }
 0x48e   :  { %v1413_v56 = vpop.permute.xlu1 %1412  ;;  %v1432_v44 = vpop.permute.xlu0 %1431 }
 0x492   :  { %v1451_v51 = vpop.permute.xlu1 %1450  ;;  %v1470_v38 = vpop.permute.xlu0 %1469 }
 0x4a1   :  { %v2619_v1 = vpop.permute.xlu1 %2618  ;;  %v2609_v40 = vpop.permute.xlu0 %2608 }
 0x4a2   :  { %v2611_v29 = vunpack.i.h.bf16 %v2609_v40  ;;  %v2610_v31 = vunpack.i.l.bf16 %v2609_v40  ;;  %v2621_v62 = vunpack.i.h.bf16 %v2619_v1  ;;  %v2620_v32 = vunpack.i.l.bf16 %v2619_v1 }
 0x4a4   :  { %v1382_v39 = vsel %vm233_vm1, %v1377_v4, %v2610_v31  ;;  %v1383_v47 = vsel %vm233_vm1, %v2610_v31, %v2611_v29  ;;  %v1419_v35 = vsel %vm1418_vm13, %v1413_v56, %v2620_v32  ;;  %v1420_v61 = vsel %vm1418_vm13, %v2620_v32, %v2621_v62  ;;  %v2009_v56 = vld [vmem:[%s3374_s8] sm:$0xff]  }
 0x4a5   :  { %v2362_v10 = vpack.c.bf16 %v1382_v39, %v3271_v20  ;;  %v2629_v33 = vpop.permute.xlu1 %2628  ;;  %v2614_v14 = vpop.permute.xlu0 %2613  ;;  %v2360_v11 = vpack.c.bf16 %v1383_v47, %v1362_v60  ;;  %v2380_v29 = vunpack.c.h.s8.bf16 %v2009_v56  ;;  %v2453_v39 = vld [vmem:[%s3374_s8 + $0x8] sm:$0xff]  }
 0x4a6   :  { %v2616_v58 = vunpack.i.h.bf16 %v2614_v14  ;;  %v2615_v16 = vunpack.i.l.bf16 %v2614_v14  ;;  %v2631_v34 = vunpack.i.h.bf16 %v2629_v33  ;;  %v2630_v43 = vunpack.i.l.bf16 %v2629_v33 }
 0x4a7   :  { %2361 = vmatprep.subr.bf16.mxu1 %v2360_v11  ;;  %v2384_v14 = vunpack.c.l.s8.bf16 %v2453_v39 }
 0x4a8   :  { %v1400_v45 = vsel %vm280_vm2, %v1395_v37, %v2615_v16  ;;  %2363 = vmatpush1.bf16.msra.mxu1 %v2362_v10  ;;  %v1401_v2 = vsel %vm280_vm2, %v2615_v16, %v2616_v58  ;;  %v1457_v28 = vsel %vm1456_vm14, %v1451_v51, %v2630_v43  ;;  %v1458_v59 = vsel %vm1456_vm14, %v2630_v43, %v2631_v34  ;;  %v2455_v16 = vld [vmem:[%s3374_s8 + $0x10] sm:$0xf]   ;;  %v1712_v43 = vld [vmem:[%s3374_s8 + $0x14] sm:$0x3] }
 0x4a9   :  { %v2366_v36 = vpack.c.bf16 %v1419_v35, %v1400_v45  ;;  %v2639_v41 = vpop.permute.xlu1 %2638  ;;  %v2624_v24 = vpop.permute.xlu0 %2623  ;;  %v2364_v42 = vpack.c.bf16 %v1420_v61, %v1401_v2  ;;  %vm1512_vm2 = vcmask 867328   ;;  %v2376_v51 = vunpack.c.l.s8.bf16 %v2009_v56  ;;  %v1713_v35 = vld [vmem:[%s3374_s8 + $0x16] sm:$0x1] }
 0x4aa   :  { %v2626_v46 = vunpack.i.h.bf16 %v2624_v24  ;;  %v2625_v48 = vunpack.i.l.bf16 %v2624_v24  ;;  %v2641_v49 = vunpack.i.h.bf16 %v2639_v41  ;;  %v2640_v50 = vunpack.i.l.bf16 %v2639_v41 }
 0x4ab   :  { %2365 = vmatprep.subr.bf16.mxu1 %v2364_v42  ;;  %2377 = vmatprep.subr.bf16.mxu0 %v2376_v51  ;;  %v2388_v58 = vunpack.c.h.s8.bf16 %v2453_v39  ;;  %v2392_v34 = vunpack.c.l.s8.bf16 %v2455_v16  ;;  %v1724_v45 = vunpack.c.0.s8 %v1712_v43  ;;  %v1725_v2 = vunpack.c.0.s8 %v1713_v35 }
 0x4ac   :  { %v1438_v3 = vsel %vm1437_vm15, %v1432_v44, %v2625_v48  ;;  %2367 = vmatpush1.bf16.msra.mxu1 %v2366_v36  ;;  %v1439_v5 = vsel %vm1437_vm15, %v2625_v48, %v2626_v46  ;;  %v1495_v6 = vsel %vm1493_vm0, %v2640_v50, %v2641_v49  ;;  %2379 = vmatpush3.bf16.msra.mxu0 %v2376_v51 }
 0x4ad   :  { %v2370_v25 = vpack.c.bf16 %v1457_v28, %v1438_v3  ;;  %v1488_v30 = vpop.permute.xlu1 %1487  ;;  %v2634_v53 = vpop.permute.xlu0 %2633  ;;  %v2368_v8 = vpack.c.bf16 %v1458_v59, %v1439_v5  ;;  %2381 = vmatprep.subr.bf16.mxu0 %v2380_v29  ;;  %v1736_v61 = vcvt.s32.f32 %v1724_v45  ;;  %v1737_v36 = vcvt.s32.f32 %v1725_v2 }
 0x4ae   :  { %v2636_v52 = vunpack.i.h.bf16 %v2634_v53  ;;  %v2635_v13 = vunpack.i.l.bf16 %v2634_v53  ;;  %v1494_v12 = vsel %vm1493_vm0, %v1488_v30, %v2640_v50 }
 0x4af   :  { %2369 = vmatprep.subr.bf16.mxu1 %v2368_v8  ;;  %v2396_v41 = vpack.c.bf16 %v1737_v36, %v1736_v61 }
 0x4b0   :  { %v1475_v15 = vsel %vm421_vm5, %v1470_v38, %v2635_v13  ;;  %2371 = vmatpush1.bf16.msra.mxu1 %v2370_v25  ;;  %v1476_v17 = vsel %vm421_vm5, %v2635_v13, %v2636_v52  ;;  %2383 = vmatpush3.bf16.msra.mxu0 %v2380_v29  ;;  %vm1738_vm5 = vcmask 728064  }
 0x4b1   :  { %v2374_v18 = vpack.c.bf16 %v1494_v12, %v1475_v15  ;;  %v1511_v19 = vpop.permute.xlu1 %1510  ;;  %v1509_v63 = vpop.permute.xlu0 %1508  ;;  %v2372_v20 = vpack.c.bf16 %v1495_v6, %v1476_v17  ;;  %2385 = vmatprep.subr.bf16.mxu0 %v2384_v14 }
 0x4b2   :  { %v1514_v21 = vsel %vm1512_vm2, %v1509_v63, %v1511_v19 }
 0x4b3   :  { %2373 = vmatprep.subr.bf16.mxu1 %v2372_v20 }
 0x4b4   :  { %2375 = vmatpush1.bf16.msra.mxu1 %v2374_v18  ;;  %2387 = vmatpush3.bf16.msra.mxu0 %v2384_v14 }
 0x4b5   :  { %v1507_v22 = vpop.permute.xlu0 %1506  ;;  %1561 = vmatprep.subr.mxu1 %v1514_v21  ;;  %2389 = vmatprep.subr.bf16.mxu0 %v2388_v58 }
 0x4b6   :  { %v1513_v55 = vsel %vm1512_vm2, %v1507_v22, %v1509_v63 }
 0x4b8   :  { %1562 = vmatpush1.msra.mxu1 %v1513_v55  ;;  %2391 = vmatpush3.bf16.msra.mxu0 %v2388_v58 }
 0x4b9   :  { %1922 = vmatmul.mubr.msk.f32.vlgmr.msra.gmra.mrb[6].mxu1 %vm636_vm9, %v1519_v57  ;;  %2403 = vmatprep.subr.bf16.mxu1 %v2376_v51 }
 0x4ba   :  { %1615 = vmatprep.mubr.f32.mxu1 %v3241_v9  ;;  %2405 = vmatpush3.bf16.msra.mxu1 %v2376_v51 }
 0x4bb   :  { %2407 = vmatprep.subr.bf16.mxu1 %v2380_v29  ;;  %2393 = vmatprep.subr.bf16.mxu0 %v2392_v34 }
 0x4bc   :  { %2395 = vmatpush3.bf16.msra.mxu0 %v2392_v34 }
 0x4bd   :  { %1923 = vmatmul.mubr.msk.f32.gmra.mrb[8].mxu1 %vm636_vm9, %v1520_v7  ;;  %2398 = vmatprep.subr.msk.bf16.mxu0 %vm2397_vm4, %v2396_v41 }
 0x4be   :  { %2409 = vmatpush3.bf16.msra.mxu1 %v2380_v29 }
 0x4bf   :  { %2411 = vmatprep.subr.bf16.mxu1 %v2384_v14 }
 0x4c0   :  { %2401 = vmatpush3.bf16.msk.msra.mxu0 %vm2397_vm4, %v2396_v41 }
 0x4c2   :  { %v1627_v60 = vpop.permute.xlu1 %1626  ;;  %2413 = vmatpush3.bf16.msra.mxu1 %v2384_v14 }
 0x4c3   :  { %2415 = vmatprep.subr.bf16.mxu1 %v2388_v58 }
 0x4c6   :  { %v1632_v23 = vpop.permute.xlu0 %1631  ;;  %v1643_v0 = vpop.permute.xlu1 %1642  ;;  %2417 = vmatpush3.bf16.msra.mxu1 %v2388_v58 }
 0x4c7   :  { %2419 = vmatprep.subr.bf16.mxu1 %v2392_v34 }
 0x4ca   :  { %v1648_v31 = vpop.permute.xlu0 %1647  ;;  %2421 = vmatpush3.bf16.msra.mxu1 %v2392_v34 }
 0x4cb   :  { %2424 = vmatprep.subr.msk.bf16.mxu1 %vm2397_vm4, %v2396_v41 }
 0x4ce   :  { %2427 = vmatpush3.bf16.msk.msra.mxu1 %vm2397_vm4, %v2396_v41 }
 0x58c   :  { %v1611_v26 = vpop.f32.mrb[6].mxu1 }
 0x58d   :  { %v1634_v27 = vmul.f32 %v1627_v60, %v1611_v26  ;;  %v1613_v54 = vpop.f32.mrb[7].mxu1 }
 0x58e   :  { %v1635_v4 = vmul.f32 %v1627_v60, %v1613_v54 }
 0x58f   :  { %v3323_v37 = vadd.f32 %v1643_v0, %v1634_v27 }
 0x590   :  { %v1651_v9 = vadd.f32 %v1643_v0, %v1635_v4  ;;  %v1617_v44 = vpop.f32.mrb[8].mxu1 }
 0x591   :  { %v1654_v38 = vmax.f32 %v3323_v37, 0.0  ;;  %v1636_v1 = vmul.f32 %v1632_v23, %v1617_v44  ;;  %v1619_v40 = vpop.f32.mrb[9].mxu1 }
 0x592   :  { %v1655_v62 = vmax.f32 %v1651_v9, 0.0  ;;  %v1637_v32 = vmul.f32 %v1632_v23, %v1619_v40 }
 0x593   :  { %v1652_v47 = vadd.f32 %v1648_v31, %v1636_v1  ;;  %1662 = vrot.lane.b32.xlu1 %v1654_v38, %s2662_s0 }
 0x594   :  { %v1653_v10 = vadd.f32 %v1648_v31, %v1637_v32  ;;  %1664 = vrot.lane.b32.xlu0 %v1655_v62, %s2662_s0 }
 0x595   :  { %v1656_v33 = vmax.f32 %v1652_v47, 0.0 }
 0x596   :  { %v1657_v11 = vmax.f32 %v1653_v10, 0.0 }
 0x597   :  { %1666 = vrot.lane.b32.xlu1 %v1656_v33, %s2662_s0 }
 0x598   :  { %1668 = vrot.lane.b32.xlu0 %v1657_v11, %s2662_s0 }
 0x605   :  { %v1663_v24 = vpop.permute.xlu1 %1662 }
 0x606   :  { %v1665_v42 = vpop.permute.xlu0 %1664 }
 0x607   :  { %v1670_v46 = vsel %vm233_vm1, %v1663_v24, %v1665_v42  ;;  %v1677_v48 = vmax.f32 %v1655_v62, %v1665_v42 }
 0x608   :  { %v1676_v28 = vmax.f32 %v1654_v38, %v1670_v46 }
 0x609   :  { %v1667_v59 = vpop.permute.xlu1 %1666  ;;  %1686 = vrot.lane.b32.xlu0 %v1677_v48, %s2674_s29 }
 0x60a   :  { %1684 = vrot.lane.b32.xlu1 %v1676_v28, %s2674_s29  ;;  %v1669_v49 = vpop.permute.xlu0 %1668 }
 0x60b   :  { %v1671_v50 = vsel %vm233_vm1, %v1667_v59, %v1669_v49  ;;  %v1679_v3 = vmax.f32 %v1657_v11, %v1669_v49  ;;  %vm1823_vm1 = vcmask 130048  }
 0x60c   :  { %v1678_v5 = vmax.f32 %v1656_v33, %v1671_v50 }
 0x60d   :  { %1690 = vrot.lane.b32.xlu0 %v1679_v3, %s2674_s29 }
 0x60e   :  { %1688 = vrot.lane.b32.xlu1 %v1678_v5, %s2674_s29 }
 0x67b   :  { %v1687_v25 = vpop.permute.xlu0 %1686 }
 0x67c   :  { %v1699_v30 = vmax.f32 %v1677_v48, %v1687_v25  ;;  %v1685_v53 = vpop.permute.xlu1 %1684 }
 0x67d   :  { %v1692_v8 = vsel %vm1418_vm13, %v1685_v53, %v1687_v25 }
 0x67e   :  { %v1698_v52 = vmax.f32 %v1676_v28, %v1692_v8  ;;  %2227 = vmatprep.mubr.msk.f32.mxu1 %vm1738_vm5, %v1699_v30 }
 0x67f   :  { %v1691_v13 = vpop.permute.xlu0 %1690 }
 0x680   :  { %v1701_v12 = vmax.f32 %v1679_v3, %v1691_v13  ;;  %v1689_v15 = vpop.permute.xlu1 %1688  ;;  %2200 = vmatprep.mubr.msk.f32.mxu0 %vm1738_vm5, %v1698_v52 }
 0x681   :  { %v1693_v17 = vsel %vm1418_vm13, %v1689_v15, %v1691_v13 }
 0x682   :  { %v1700_v6 = vmax.f32 %v1678_v5, %v1693_v17  ;;  %2228 = vmatmul.mubr.msk.f32.vlgmr.msra.gmra.mrb[10].mxu1 %vm1738_vm5, %v1701_v12 }
 0x684   :  { %2201 = vmatmul.mubr.msk.f32.vlgmr.msra.gmra.mrb[8].mxu0 %vm1738_vm5, %v1700_v6 }
 0x755   :  { %v2229_v18 = vpop.f32.mrb[10].mxu1 }
 0x756   :  { %1931 = vst.msk [vmem:[%s3375_s9 + $0x18] sm:$0xff] %vm1823_vm1, %v2229_v18  ;;  %v1898_v19 = vpop.f32.mrb[11].mxu1 }
 0x757   :  { %1930 = vst.msk [vmem:[%s3375_s9 + $0x10] sm:$0xff] %vm1823_vm1, %v1898_v19  ;;  %v2202_v63 = vpop.f32.mrb[8].mxu0 }
 0x758   :  { %1825 = vst.msk [vmem:[%s3375_s9 + $0x8] sm:$0xff] %vm1823_vm1, %v2202_v63  ;;  %v1814_v20 = vpop.f32.mrb[9].mxu0 }
 0x759   :  { %1824 = vst.msk [vmem:[%s3375_s9] sm:$0xff] %vm1823_vm1, %v1814_v20 }

</bundles_post_ra>
